<compile_context>
chip_gen: v6e
topology: v6e:2x2x1
jax: 0.10.0
libtpu: 0.0.40
codegen_flags: <defaults>
</compile_context>

<pallas_src>
import functools

import jax
import jax.numpy as jnp
import numpy as np
from jax.experimental import pallas as pl
from jax.experimental.pallas import tpu as pltpu


# --------------------------------------------------------------------------
# Fused kernel: maxpool(2) -> conv3x3(GEMM) -> ReLU -> partial conv3x3(GEMM)
#               -> passthrough combine -> ReLU.  One grid step == one image.
# --------------------------------------------------------------------------
def _down_kernel(x_ref, w1_ref, wp_ref, o_ref, pad1_ref, padp_ref, *,
                 Hp, Wp, Cin, Cc, Cout):
    # x_ref  : (1, Hp, 2, Wp, 2*Cin) f32   -- pooling-window view of one NHWC image
    # w1_ref : (9*Cin, Cout) bf16          -- conv1 weights, row = (ky*3+kx)*Cin + c
    # wp_ref : (9*Cc,  Cout) bf16          -- pconv weights, columns >= Cc are zero
    # o_ref  : (1, Hp, Wp*Cout) f32        -- lane-dense NHWC output block
    # pad1_ref / padp_ref : zero-padded VMEM halos for the two 3x3 convs
    M = Hp * Wp

    # ---- MaxPool2d(2): 2x2 / stride 2, entirely in VMEM ------------------
    r0 = x_ref[0, :, 0, :, :]                                   # rows h = 2*hp
    r1 = x_ref[0, :, 1, :, :]                                   # rows h = 2*hp + 1
    rows = jnp.maximum(r0, r1)                                  # (Hp, Wp, 2*Cin)
    pooled = jnp.maximum(rows[:, :, :Cin], rows[:, :, Cin:])    # (Hp, Wp, Cin)

    # ---- conv1 halo (3x3, pad 1).  Full zero each step: scratch contents are
    # undefined per-core and a program_id==0 guard is unsafe under megacore
    # "parallel" partitioning; the interior is then fully overwritten. ------
    pad1_ref[...] = jnp.zeros_like(pad1_ref)
    pad1_ref[1:Hp + 1, 1:Wp + 1, :] = pooled

    def im2col(pad_ref, C):
        # (M, 9*C) patch; column block t = ky*3 + kx holds the shifted window.
        taps = []
        for ky in range(3):
            for kx in range(3):
                taps.append(pad_ref[ky:ky + Hp, kx:kx + Wp, :].reshape(M, C))
        return jnp.concatenate(taps, axis=-1)

    # ---- Conv2d(Cin->Cout): ONE (M, 9*Cin) x (9*Cin, Cout) GEMM + ReLU ----
    patch1 = im2col(pad1_ref, Cin).astype(jnp.bfloat16)
    y1 = jnp.dot(patch1, w1_ref[...], preferred_element_type=jnp.float32)
    y1 = jnp.maximum(y1, 0.0)                                   # (M, Cout), f32, >= 0

    # ---- PConv2d on the first Cc channels: second single GEMM ------------
    padp_ref[...] = jnp.zeros_like(padp_ref)
    padp_ref[1:Hp + 1, 1:Wp + 1, :] = y1[:, :Cc].reshape(Hp, Wp, Cc)
    patchp = im2col(padp_ref, Cc).astype(jnp.bfloat16)
    # wp_ref columns >= Cc are exactly zero, so the GEMM writes the partial
    # conv into columns [0, Cc) and exact zeros elsewhere -- no lane concat.
    pconv = jnp.dot(patchp, wp_ref[...], preferred_element_type=jnp.float32)

    # ---- concat-free combine: passthrough channels added back, final ReLU.
    # ReLU is idempotent on y1 >= 0, so cols >= Cc come out as y1[:, Cc:]. --
    col = jax.lax.broadcasted_iota(jnp.int32, (M, Cout), 1)
    out = jnp.maximum(pconv + jnp.where(col >= Cc, y1, 0.0), 0.0)   # (M, Cout)

    # ---- lane-dense store into the (1, Hp, Wp*Cout) output block ----------
    out3 = out.reshape(Hp, Wp, Cout)
    for w in range(Wp):
        o_ref[0, :, w * Cout:(w + 1) * Cout] = out3[:, w, :].astype(o_ref.dtype)


# --------------------------------------------------------------------------
# Public wrapper: NCHW in / NCHW out (PyTorch convention), params in PyTorch
# OIHW layout with bias=False (as in the module).
# --------------------------------------------------------------------------
def down_forward(x_nchw, params):
    w1 = params["w1"]                      # (Cout, Cin, 3, 3)
    wp = params["wp"]                      # (Cc,   Cc,  3, 3), Cc = Cout // 4
    N, Cin, H, W = x_nchw.shape
    Cout = w1.shape[0]
    Cc = wp.shape[0]
    assert H % 2 == 0 and W % 2 == 0 and Cc >= 1
    Hp, Wp = H // 2, W // 2

    # Layout glue (fused by XLA into one pass over x):
    # NCHW -> NHWC + a free row-major view exposing the 2x2 pooling window.
    # TODO(synk): if the surrounding model keeps NHWC activations, drop these
    # boundary transposes entirely (they cost more HBM traffic than the kernel
    # at these channel counts -- review item 7).
    x = jnp.transpose(x_nchw, (0, 2, 3, 1)).astype(jnp.float32)
    x_view = x.reshape(N, Hp, 2, Wp, 2 * Cin)

    # OIHW -> (9*Cin, Cout) GEMM layout (row index = (ky*3+kx)*Cin + c), bf16.
    w1_g = jnp.transpose(w1, (2, 3, 1, 0)).reshape(9 * Cin, Cout).astype(jnp.bfloat16)
    # Partial-conv weights zero-extended to all Cout output columns so the
    # kernel never concatenates along the lane dimension.
    wp_g = jnp.transpose(wp, (2, 3, 1, 0)).reshape(9 * Cc, Cc)
    wp_g = jnp.pad(wp_g, ((0, 0), (0, Cout - Cc))).astype(jnp.bfloat16)

    kernel = functools.partial(_down_kernel, Hp=Hp, Wp=Wp, Cin=Cin, Cc=Cc, Cout=Cout)

    out_flat = pl.pallas_call(
        kernel,
        out_shape=jax.ShapeDtypeStruct((N, Hp, Wp * Cout), jnp.float32),
        grid=(N,),
        in_specs=[
            pl.BlockSpec((1, Hp, 2, Wp, 2 * Cin), lambda n: (n, 0, 0, 0, 0)),
            pl.BlockSpec((9 * Cin, Cout), lambda n: (0, 0)),   # resident, not re-DMA'd
            pl.BlockSpec((9 * Cc, Cout), lambda n: (0, 0)),
        ],
        out_specs=pl.BlockSpec((1, Hp, Wp * Cout), lambda n: (n, 0, 0)),
        scratch_shapes=[
            pltpu.VMEM((Hp + 2, Wp + 2, Cin), jnp.float32),    # conv1 halo
            pltpu.VMEM((Hp + 2, Wp + 2, Cc), jnp.float32),     # pconv halo
        ],
        compiler_params=pltpu.CompilerParams(
            dimension_semantics=("parallel",),                 # >=2 steps -> both v7x TCs
            vmem_limit_bytes=32 * 1024 * 1024,
        ),
    )(x_view, w1_g, wp_g)

    out = out_flat.reshape(N, Hp, Wp, Cout)
    return jnp.transpose(out, (0, 3, 1, 2))                    # back to NCHW


# --------------------------------------------------------------------------
# Pure-JAX f32 reference (correctness check only)
# --------------------------------------------------------------------------
def _reference_forward(x_nchw, params):
    w1, wp = params["w1"], params["wp"]
    N, Cin, H, W = x_nchw.shape
    Cc = wp.shape[0]

    xp = jnp.max(x_nchw.reshape(N, Cin, H // 2, 2, W // 2, 2), axis=(3, 5))  # MaxPool2d(2)

    def conv(h, w):
        return jax.lax.conv_general_dilated(
            h, w, window_strides=(1, 1), padding=[(1, 1), (1, 1)],
            dimension_numbers=("NCHW", "OIHW", "NCHW"),
            precision=jax.lax.Precision.HIGHEST)

    y1 = jax.nn.relu(conv(xp, w1))                                    # conv -> ReLU
    y2 = jnp.concatenate([conv(y1[:, :Cc], wp), y1[:, Cc:]], axis=1)  # PConv2d
    return jax.nn.relu(y2)                                            # final ReLU


if __name__ == "__main__":
    key = jax.random.PRNGKey(0)
    kx, k1, k2 = jax.random.split(key, 3)

    # Small shapes consistent with the module: Down(in_channels=4, out_channels=32)
    N, Cin, H, W = 2, 4, 16, 16
    Cout = 32
    Cc = Cout // 4                                  # PConv2d dim_conv3

    x = jax.random.normal(kx, (N, Cin, H, W), jnp.float32)          # NCHW, like PyTorch
    params = {
        "w1": 0.1 * jax.random.normal(k1, (Cout, Cin, 3, 3), jnp.float32),  # bias=False
        "wp": 0.1 * jax.random.normal(k2, (Cc, Cc, 3, 3), jnp.float32),     # bias=False
    }

    fwd = jax.jit(down_forward)
    y = jax.block_until_ready(fwd(x, params))

    y_ref = _reference_forward(x, params)
    assert y.shape == (N, Cout, H // 2, W // 2), y.shape
    err = float(np.max(np.abs(np.asarray(y) - np.asarray(y_ref))))
    # bf16 MXU operands + f32 accumulation vs. an f32 (HIGHEST precision) reference
    assert np.allclose(np.asarray(y), np.asarray(y_ref), atol=2e-2, rtol=2e-2), err

    print("KERNEL_OK")
</pallas_src>

<mosaic_0001>
module attributes {stable_mosaic.version = 11 : i64} {
  func.func @_down_kernel(%arg0: i32, %arg1: memref<1x8x2x8x8xf32, #tpu.memory_space<vmem>>, %arg2: memref<36x32xbf16, #tpu.memory_space<vmem>>, %arg3: memref<72x32xbf16, #tpu.memory_space<vmem>>, %arg4: memref<1x8x256xf32, #tpu.memory_space<vmem>>, %arg5: memref<10x10x4xf32, #tpu.memory_space<vmem>>, %arg6: memref<10x10x8xf32, #tpu.memory_space<vmem>>) attributes {dimension_semantics = [#tpu.dimension_semantics<parallel>], iteration_bounds = array<i64: 2>, scalar_prefetch = 0 : i64, scratch_operands = 2 : i64, tpu.core_type = #tpu.core_type<tc>, window_params = [{transform_indices = @transform_0, window_bounds = array<i64: 1, 8, 2, 8, 8>}, {pipeline_mode = #tpu.pipeline_mode<synchronous>, transform_indices = @transform_1, window_bounds = array<i64: 36, 32>}, {pipeline_mode = #tpu.pipeline_mode<synchronous>, transform_indices = @transform_2, window_bounds = array<i64: 72, 32>}, {transform_indices = @transform_3, window_bounds = array<i64: 1, 8, 256>}]} {
    %c0 = arith.constant 0 : index
    %c0_0 = arith.constant 0 : index
    %c0_1 = arith.constant 0 : index
    %c0_2 = arith.constant 0 : index
    %c0_3 = arith.constant 0 : index
    %0 = vector.load %arg1[%c0, %c0_0, %c0_1, %c0_2, %c0_3] : memref<1x8x2x8x8xf32, #tpu.memory_space<vmem>>, vector<1x8x1x8x8xf32>
    %1 = vector.shape_cast %0 : vector<1x8x1x8x8xf32> to vector<8x8x8xf32>
    %c0_4 = arith.constant 0 : index
    %c0_5 = arith.constant 0 : index
    %c1 = arith.constant 1 : index
    %c0_6 = arith.constant 0 : index
    %c0_7 = arith.constant 0 : index
    %2 = vector.load %arg1[%c0_4, %c0_5, %c1, %c0_6, %c0_7] : memref<1x8x2x8x8xf32, #tpu.memory_space<vmem>>, vector<1x8x1x8x8xf32>
    %3 = vector.shape_cast %2 : vector<1x8x1x8x8xf32> to vector<8x8x8xf32>
    %4 = arith.maximumf %1, %3 : vector<8x8x8xf32>
    %5 = vector.extract_strided_slice %4 {offsets = [0, 0, 0], sizes = [8, 8, 4], strides = [1, 1, 1]} : vector<8x8x8xf32> to vector<8x8x4xf32>
    %6 = vector.extract_strided_slice %4 {offsets = [0, 0, 4], sizes = [8, 8, 4], strides = [1, 1, 1]} : vector<8x8x8xf32> to vector<8x8x4xf32>
    %7 = arith.maximumf %5, %6 : vector<8x8x4xf32>
    %cst = arith.constant 0.000000e+00 : f32
    %8 = vector.broadcast %cst : f32 to vector<10x10x4xf32>
    %c0_8 = arith.constant 0 : index
    %c0_9 = arith.constant 0 : index
    %c0_10 = arith.constant 0 : index
    %9 = vector.load %arg5[%c0_8, %c0_9, %c0_10] : memref<10x10x4xf32, #tpu.memory_space<vmem>>, vector<10x10x4xf32>
    tpu.vector_store %arg5[%c0_8, %c0_9, %c0_10], %8 {strides = array<i32>} : memref<10x10x4xf32, #tpu.memory_space<vmem>>, vector<10x10x4xf32>,
    %c1_11 = arith.constant 1 : index
    %c1_12 = arith.constant 1 : index
    %c0_13 = arith.constant 0 : index
    %10 = vector.load %arg5[%c1_11, %c1_12, %c0_13] : memref<10x10x4xf32, #tpu.memory_space<vmem>>, vector<8x8x4xf32>
    tpu.vector_store %arg5[%c1_11, %c1_12, %c0_13], %7 {strides = array<i32>} : memref<10x10x4xf32, #tpu.memory_space<vmem>>, vector<8x8x4xf32>,
    %c0_14 = arith.constant 0 : index
    %c0_15 = arith.constant 0 : index
    %c0_16 = arith.constant 0 : index
    %11 = vector.load %arg5[%c0_14, %c0_15, %c0_16] : memref<10x10x4xf32, #tpu.memory_space<vmem>>, vector<8x8x4xf32>
    %12 = vector.shape_cast %11 : vector<8x8x4xf32> to vector<64x4xf32>
    %c0_17 = arith.constant 0 : index
    %c1_18 = arith.constant 1 : index
    %c0_19 = arith.constant 0 : index
    %13 = vector.load %arg5[%c0_17, %c1_18, %c0_19] : memref<10x10x4xf32, #tpu.memory_space<vmem>>, vector<8x8x4xf32>
    %14 = vector.shape_cast %13 : vector<8x8x4xf32> to vector<64x4xf32>
    %c0_20 = arith.constant 0 : index
    %c2 = arith.constant 2 : index
    %c0_21 = arith.constant 0 : index
    %15 = vector.load %arg5[%c0_20, %c2, %c0_21] : memref<10x10x4xf32, #tpu.memory_space<vmem>>, vector<8x8x4xf32>
    %16 = vector.shape_cast %15 : vector<8x8x4xf32> to vector<64x4xf32>
    %c1_22 = arith.constant 1 : index
    %c0_23 = arith.constant 0 : index
    %c0_24 = arith.constant 0 : index
    %17 = vector.load %arg5[%c1_22, %c0_23, %c0_24] : memref<10x10x4xf32, #tpu.memory_space<vmem>>, vector<8x8x4xf32>
    %18 = vector.shape_cast %17 : vector<8x8x4xf32> to vector<64x4xf32>
    %c1_25 = arith.constant 1 : index
    %c1_26 = arith.constant 1 : index
    %c0_27 = arith.constant 0 : index
    %19 = vector.load %arg5[%c1_25, %c1_26, %c0_27] : memref<10x10x4xf32, #tpu.memory_space<vmem>>, vector<8x8x4xf32>
    %20 = vector.shape_cast %19 : vector<8x8x4xf32> to vector<64x4xf32>
    %c1_28 = arith.constant 1 : index
    %c2_29 = arith.constant 2 : index
    %c0_30 = arith.constant 0 : index
    %21 = vector.load %arg5[%c1_28, %c2_29, %c0_30] : memref<10x10x4xf32, #tpu.memory_space<vmem>>, vector<8x8x4xf32>
    %22 = vector.shape_cast %21 : vector<8x8x4xf32> to vector<64x4xf32>
    %c2_31 = arith.constant 2 : index
    %c0_32 = arith.constant 0 : index
    %c0_33 = arith.constant 0 : index
    %23 = vector.load %arg5[%c2_31, %c0_32, %c0_33] : memref<10x10x4xf32, #tpu.memory_space<vmem>>, vector<8x8x4xf32>
    %24 = vector.shape_cast %23 : vector<8x8x4xf32> to vector<64x4xf32>
    %c2_34 = arith.constant 2 : index
    %c1_35 = arith.constant 1 : index
    %c0_36 = arith.constant 0 : index
    %25 = vector.load %arg5[%c2_34, %c1_35, %c0_36] : memref<10x10x4xf32, #tpu.memory_space<vmem>>, vector<8x8x4xf32>
    %26 = vector.shape_cast %25 : vector<8x8x4xf32> to vector<64x4xf32>
    %c2_37 = arith.constant 2 : index
    %c2_38 = arith.constant 2 : index
    %c0_39 = arith.constant 0 : index
    %27 = vector.load %arg5[%c2_37, %c2_38, %c0_39] : memref<10x10x4xf32, #tpu.memory_space<vmem>>, vector<8x8x4xf32>
    %28 = vector.shape_cast %27 : vector<8x8x4xf32> to vector<64x4xf32>
    %29 = tpu.concatenate %12, %14, %16, %18, %20, %22, %24, %26, %28 in 1 : vector<64x4xf32>, vector<64x4xf32>, vector<64x4xf32>, vector<64x4xf32>, vector<64x4xf32>, vector<64x4xf32>, vector<64x4xf32>, vector<64x4xf32>, vector<64x4xf32> -> vector<64x36xf32>
    %30 = arith.truncf %29 : vector<64x36xf32> to vector<64x36xbf16>
    %c0_40 = arith.constant 0 : index
    %c0_41 = arith.constant 0 : index
    %31 = vector.load %arg2[%c0_40, %c0_41] : memref<36x32xbf16, #tpu.memory_space<vmem>>, vector<36x32xbf16>
    %cst_42 = arith.constant dense<0.000000e+00> : vector<64x32xf32>
    %32 = tpu.matmul %30, %31, %cst_42 {dimension_numbers = #tpu.dot_dimension_numbers<[1], [0], [0], [1], [0, 0, 1, 1], [], []>} : vector<64x36xbf16>, vector<36x32xbf16>, vector<64x32xf32> -> vector<64x32xf32>
    %cst_43 = arith.constant 0.000000e+00 : f32
    %33 = vector.broadcast %cst_43 : f32 to vector<64x32xf32>
    %34 = arith.maximumf %32, %33 : vector<64x32xf32>
    %cst_44 = arith.constant 0.000000e+00 : f32
    %35 = vector.broadcast %cst_44 : f32 to vector<10x10x8xf32>
    %c0_45 = arith.constant 0 : index
    %c0_46 = arith.constant 0 : index
    %c0_47 = arith.constant 0 : index
    %36 = vector.load %arg6[%c0_45, %c0_46, %c0_47] : memref<10x10x8xf32, #tpu.memory_space<vmem>>, vector<10x10x8xf32>
    tpu.vector_store %arg6[%c0_45, %c0_46, %c0_47], %35 {strides = array<i32>} : memref<10x10x8xf32, #tpu.memory_space<vmem>>, vector<10x10x8xf32>,
    %37 = vector.extract_strided_slice %34 {offsets = [0, 0], sizes = [64, 8], strides = [1, 1]} : vector<64x32xf32> to vector<64x8xf32>
    %38 = vector.shape_cast %37 : vector<64x8xf32> to vector<8x8x8xf32>
    %c1_48 = arith.constant 1 : index
    %c1_49 = arith.constant 1 : index
    %c0_50 = arith.constant 0 : index
    %39 = vector.load %arg6[%c1_48, %c1_49, %c0_50] : memref<10x10x8xf32, #tpu.memory_space<vmem>>, vector<8x8x8xf32>
    tpu.vector_store %arg6[%c1_48, %c1_49, %c0_50], %38 {strides = array<i32>} : memref<10x10x8xf32, #tpu.memory_space<vmem>>, vector<8x8x8xf32>,
    %c0_51 = arith.constant 0 : index
    %c0_52 = arith.constant 0 : index
    %c0_53 = arith.constant 0 : index
    %40 = vector.load %arg6[%c0_51, %c0_52, %c0_53] : memref<10x10x8xf32, #tpu.memory_space<vmem>>, vector<8x8x8xf32>
    %41 = vector.shape_cast %40 : vector<8x8x8xf32> to vector<64x8xf32>
    %c0_54 = arith.constant 0 : index
    %c1_55 = arith.constant 1 : index
    %c0_56 = arith.constant 0 : index
    %42 = vector.load %arg6[%c0_54, %c1_55, %c0_56] : memref<10x10x8xf32, #tpu.memory_space<vmem>>, vector<8x8x8xf32>
    %43 = vector.shape_cast %42 : vector<8x8x8xf32> to vector<64x8xf32>
    %c0_57 = arith.constant 0 : index
    %c2_58 = arith.constant 2 : index
    %c0_59 = arith.constant 0 : index
    %44 = vector.load %arg6[%c0_57, %c2_58, %c0_59] : memref<10x10x8xf32, #tpu.memory_space<vmem>>, vector<8x8x8xf32>
    %45 = vector.shape_cast %44 : vector<8x8x8xf32> to vector<64x8xf32>
    %c1_60 = arith.constant 1 : index
    %c0_61 = arith.constant 0 : index
    %c0_62 = arith.constant 0 : index
    %46 = vector.load %arg6[%c1_60, %c0_61, %c0_62] : memref<10x10x8xf32, #tpu.memory_space<vmem>>, vector<8x8x8xf32>
    %47 = vector.shape_cast %46 : vector<8x8x8xf32> to vector<64x8xf32>
    %c1_63 = arith.constant 1 : index
    %c1_64 = arith.constant 1 : index
    %c0_65 = arith.constant 0 : index
    %48 = vector.load %arg6[%c1_63, %c1_64, %c0_65] : memref<10x10x8xf32, #tpu.memory_space<vmem>>, vector<8x8x8xf32>
    %49 = vector.shape_cast %48 : vector<8x8x8xf32> to vector<64x8xf32>
    %c1_66 = arith.constant 1 : index
    %c2_67 = arith.constant 2 : index
    %c0_68 = arith.constant 0 : index
    %50 = vector.load %arg6[%c1_66, %c2_67, %c0_68] : memref<10x10x8xf32, #tpu.memory_space<vmem>>, vector<8x8x8xf32>
    %51 = vector.shape_cast %50 : vector<8x8x8xf32> to vector<64x8xf32>
    %c2_69 = arith.constant 2 : index
    %c0_70 = arith.constant 0 : index
    %c0_71 = arith.constant 0 : index
    %52 = vector.load %arg6[%c2_69, %c0_70, %c0_71] : memref<10x10x8xf32, #tpu.memory_space<vmem>>, vector<8x8x8xf32>
    %53 = vector.shape_cast %52 : vector<8x8x8xf32> to vector<64x8xf32>
    %c2_72 = arith.constant 2 : index
    %c1_73 = arith.constant 1 : index
    %c0_74 = arith.constant 0 : index
    %54 = vector.load %arg6[%c2_72, %c1_73, %c0_74] : memref<10x10x8xf32, #tpu.memory_space<vmem>>, vector<8x8x8xf32>
    %55 = vector.shape_cast %54 : vector<8x8x8xf32> to vector<64x8xf32>
    %c2_75 = arith.constant 2 : index
    %c2_76 = arith.constant 2 : index
    %c0_77 = arith.constant 0 : index
    %56 = vector.load %arg6[%c2_75, %c2_76, %c0_77] : memref<10x10x8xf32, #tpu.memory_space<vmem>>, vector<8x8x8xf32>
    %57 = vector.shape_cast %56 : vector<8x8x8xf32> to vector<64x8xf32>
    %58 = tpu.concatenate %41, %43, %45, %47, %49, %51, %53, %55, %57 in 1 : vector<64x8xf32>, vector<64x8xf32>, vector<64x8xf32>, vector<64x8xf32>, vector<64x8xf32>, vector<64x8xf32>, vector<64x8xf32>, vector<64x8xf32>, vector<64x8xf32> -> vector<64x72xf32>
    %59 = arith.truncf %58 : vector<64x72xf32> to vector<64x72xbf16>
    %c0_78 = arith.constant 0 : index
    %c0_79 = arith.constant 0 : index
    %60 = vector.load %arg3[%c0_78, %c0_79] : memref<72x32xbf16, #tpu.memory_space<vmem>>, vector<72x32xbf16>
    %cst_80 = arith.constant dense<0.000000e+00> : vector<64x32xf32>
    %61 = tpu.matmul %59, %60, %cst_80 {dimension_numbers = #tpu.dot_dimension_numbers<[1], [0], [0], [1], [0, 0, 1, 1], [], []>} : vector<64x72xbf16>, vector<72x32xbf16>, vector<64x32xf32> -> vector<64x32xf32>
    %62 = tpu.iota {dimensions = array<i32: 1>} : vector<64x32xi32>
    %c8_i32 = arith.constant 8 : i32
    %63 = vector.broadcast %c8_i32 : i32 to vector<64x32xi32>
    %64 = arith.cmpi sge, %62, %63 : vector<64x32xi32>
    %cst_81 = arith.constant 0.000000e+00 : f32
    %65 = vector.broadcast %cst_81 : f32 to vector<64x32xf32>
    %66 = arith.select %64, %34, %65 : vector<64x32xi1>, vector<64x32xf32>
    %67 = arith.addf %61, %66 : vector<64x32xf32>
    %cst_82 = arith.constant 0.000000e+00 : f32
    %68 = vector.broadcast %cst_82 : f32 to vector<64x32xf32>
    %69 = arith.maximumf %67, %68 : vector<64x32xf32>
    %70 = vector.shape_cast %69 : vector<64x32xf32> to vector<8x8x32xf32>
    %71 = vector.extract_strided_slice %70 {offsets = [0, 0, 0], sizes = [8, 1, 32], strides = [1, 1, 1]} : vector<8x8x32xf32> to vector<8x1x32xf32>
    %72 = vector.shape_cast %71 : vector<8x1x32xf32> to vector<8x32xf32>
    %c0_83 = arith.constant 0 : index
    %c0_84 = arith.constant 0 : index
    %c0_85 = arith.constant 0 : index
    %73 = vector.load %arg4[%c0_83, %c0_84, %c0_85] : memref<1x8x256xf32, #tpu.memory_space<vmem>>, vector<1x8x32xf32>
    %74 = vector.shape_cast %73 : vector<1x8x32xf32> to vector<8x32xf32>
    %75 = vector.shape_cast %72 : vector<8x32xf32> to vector<1x8x32xf32>
    tpu.vector_store %arg4[%c0_83, %c0_84, %c0_85], %75 {strides = array<i32>} : memref<1x8x256xf32, #tpu.memory_space<vmem>>, vector<1x8x32xf32>,
    %76 = vector.extract_strided_slice %70 {offsets = [0, 1, 0], sizes = [8, 1, 32], strides = [1, 1, 1]} : vector<8x8x32xf32> to vector<8x1x32xf32>
    %77 = vector.shape_cast %76 : vector<8x1x32xf32> to vector<8x32xf32>
    %c0_86 = arith.constant 0 : index
    %c0_87 = arith.constant 0 : index
    %c32 = arith.constant 32 : index
    %78 = vector.load %arg4[%c0_86, %c0_87, %c32] : memref<1x8x256xf32, #tpu.memory_space<vmem>>, vector<1x8x32xf32>
    %79 = vector.shape_cast %78 : vector<1x8x32xf32> to vector<8x32xf32>
    %80 = vector.shape_cast %77 : vector<8x32xf32> to vector<1x8x32xf32>
    tpu.vector_store %arg4[%c0_86, %c0_87, %c32], %80 {strides = array<i32>} : memref<1x8x256xf32, #tpu.memory_space<vmem>>, vector<1x8x32xf32>,
    %81 = vector.extract_strided_slice %70 {offsets = [0, 2, 0], sizes = [8, 1, 32], strides = [1, 1, 1]} : vector<8x8x32xf32> to vector<8x1x32xf32>
    %82 = vector.shape_cast %81 : vector<8x1x32xf32> to vector<8x32xf32>
    %c0_88 = arith.constant 0 : index
    %c0_89 = arith.constant 0 : index
    %c64 = arith.constant 64 : index
    %83 = vector.load %arg4[%c0_88, %c0_89, %c64] : memref<1x8x256xf32, #tpu.memory_space<vmem>>, vector<1x8x32xf32>
    %84 = vector.shape_cast %83 : vector<1x8x32xf32> to vector<8x32xf32>
    %85 = vector.shape_cast %82 : vector<8x32xf32> to vector<1x8x32xf32>
    tpu.vector_store %arg4[%c0_88, %c0_89, %c64], %85 {strides = array<i32>} : memref<1x8x256xf32, #tpu.memory_space<vmem>>, vector<1x8x32xf32>,
    %86 = vector.extract_strided_slice %70 {offsets = [0, 3, 0], sizes = [8, 1, 32], strides = [1, 1, 1]} : vector<8x8x32xf32> to vector<8x1x32xf32>
    %87 = vector.shape_cast %86 : vector<8x1x32xf32> to vector<8x32xf32>
    %c0_90 = arith.constant 0 : index
    %c0_91 = arith.constant 0 : index
    %c96 = arith.constant 96 : index
    %88 = vector.load %arg4[%c0_90, %c0_91, %c96] : memref<1x8x256xf32, #tpu.memory_space<vmem>>, vector<1x8x32xf32>
    %89 = vector.shape_cast %88 : vector<1x8x32xf32> to vector<8x32xf32>
    %90 = vector.shape_cast %87 : vector<8x32xf32> to vector<1x8x32xf32>
    tpu.vector_store %arg4[%c0_90, %c0_91, %c96], %90 {strides = array<i32>} : memref<1x8x256xf32, #tpu.memory_space<vmem>>, vector<1x8x32xf32>,
    %91 = vector.extract_strided_slice %70 {offsets = [0, 4, 0], sizes = [8, 1, 32], strides = [1, 1, 1]} : vector<8x8x32xf32> to vector<8x1x32xf32>
    %92 = vector.shape_cast %91 : vector<8x1x32xf32> to vector<8x32xf32>
    %c0_92 = arith.constant 0 : index
    %c0_93 = arith.constant 0 : index
    %c128 = arith.constant 128 : index
    %93 = vector.load %arg4[%c0_92, %c0_93, %c128] : memref<1x8x256xf32, #tpu.memory_space<vmem>>, vector<1x8x32xf32>
    %94 = vector.shape_cast %93 : vector<1x8x32xf32> to vector<8x32xf32>
    %95 = vector.shape_cast %92 : vector<8x32xf32> to vector<1x8x32xf32>
    tpu.vector_store %arg4[%c0_92, %c0_93, %c128], %95 {strides = array<i32>} : memref<1x8x256xf32, #tpu.memory_space<vmem>>, vector<1x8x32xf32>,
    %96 = vector.extract_strided_slice %70 {offsets = [0, 5, 0], sizes = [8, 1, 32], strides = [1, 1, 1]} : vector<8x8x32xf32> to vector<8x1x32xf32>
    %97 = vector.shape_cast %96 : vector<8x1x32xf32> to vector<8x32xf32>
    %c0_94 = arith.constant 0 : index
    %c0_95 = arith.constant 0 : index
    %c160 = arith.constant 160 : index
    %98 = vector.load %arg4[%c0_94, %c0_95, %c160] : memref<1x8x256xf32, #tpu.memory_space<vmem>>, vector<1x8x32xf32>
    %99 = vector.shape_cast %98 : vector<1x8x32xf32> to vector<8x32xf32>
    %100 = vector.shape_cast %97 : vector<8x32xf32> to vector<1x8x32xf32>
    tpu.vector_store %arg4[%c0_94, %c0_95, %c160], %100 {strides = array<i32>} : memref<1x8x256xf32, #tpu.memory_space<vmem>>, vector<1x8x32xf32>,
    %101 = vector.extract_strided_slice %70 {offsets = [0, 6, 0], sizes = [8, 1, 32], strides = [1, 1, 1]} : vector<8x8x32xf32> to vector<8x1x32xf32>
    %102 = vector.shape_cast %101 : vector<8x1x32xf32> to vector<8x32xf32>
    %c0_96 = arith.constant 0 : index
    %c0_97 = arith.constant 0 : index
    %c192 = arith.constant 192 : index
    %103 = vector.load %arg4[%c0_96, %c0_97, %c192] : memref<1x8x256xf32, #tpu.memory_space<vmem>>, vector<1x8x32xf32>
    %104 = vector.shape_cast %103 : vector<1x8x32xf32> to vector<8x32xf32>
    %105 = vector.shape_cast %102 : vector<8x32xf32> to vector<1x8x32xf32>
    tpu.vector_store %arg4[%c0_96, %c0_97, %c192], %105 {strides = array<i32>} : memref<1x8x256xf32, #tpu.memory_space<vmem>>, vector<1x8x32xf32>,
    %106 = vector.extract_strided_slice %70 {offsets = [0, 7, 0], sizes = [8, 1, 32], strides = [1, 1, 1]} : vector<8x8x32xf32> to vector<8x1x32xf32>
    %107 = vector.shape_cast %106 : vector<8x1x32xf32> to vector<8x32xf32>
    %c0_98 = arith.constant 0 : index
    %c0_99 = arith.constant 0 : index
    %c224 = arith.constant 224 : index
    %108 = vector.load %arg4[%c0_98, %c0_99, %c224] : memref<1x8x256xf32, #tpu.memory_space<vmem>>, vector<1x8x32xf32>
    %109 = vector.shape_cast %108 : vector<1x8x32xf32> to vector<8x32xf32>
    %110 = vector.shape_cast %107 : vector<8x32xf32> to vector<1x8x32xf32>
    tpu.vector_store %arg4[%c0_98, %c0_99, %c224], %110 {strides = array<i32>} : memref<1x8x256xf32, #tpu.memory_space<vmem>>, vector<1x8x32xf32>,
    return
  }
  func.func @transform_0(%arg0: i32) -> (i32, i32, i32, i32, i32) {
    %c0_i32 = arith.constant 0 : i32
    %c0_i32_0 = arith.constant 0 : i32
    %c0_i32_1 = arith.constant 0 : i32
    %c0_i32_2 = arith.constant 0 : i32
    %c0_i32_3 = arith.constant 0 : i32
    return %arg0, %c0_i32, %c0_i32_0, %c0_i32_1, %c0_i32_2 : i32, i32, i32, i32, i32
  }
  func.func @transform_1(%arg0: i32) -> (i32, i32) {
    %c0_i32 = arith.constant 0 : i32
    %c0_i32_0 = arith.constant 0 : i32
    %c0_i32_1 = arith.constant 0 : i32
    return %c0_i32, %c0_i32_0 : i32, i32
  }
  func.func @transform_2(%arg0: i32) -> (i32, i32) {
    %c0_i32 = arith.constant 0 : i32
    %c0_i32_0 = arith.constant 0 : i32
    %c0_i32_1 = arith.constant 0 : i32
    return %c0_i32, %c0_i32_0 : i32, i32
  }
  func.func @transform_3(%arg0: i32) -> (i32, i32, i32) {
    %c0_i32 = arith.constant 0 : i32
    %c0_i32_0 = arith.constant 0 : i32
    %c0_i32_1 = arith.constant 0 : i32
    return %arg0, %c0_i32, %c0_i32_0 : i32, i32, i32
  }
}

</mosaic_0001>

<bundles_post_ra>
// kernel: down_forward.1
= control target key start
LH: loop header
LB: loop body
LE: loop exit
PB: predicated region body
PF: predicated region fallthrough
CT: control target
= control target key end

     0   :  { %s2044_s12 = smov 0   ;;  %s2665_s0 = inlined_call_operand.vmem [shape: f32[2,8,2,8,8], index: 0, kind: input, shape index: {}]   ;;  %s2666_s1 = inlined_call_operand.vmem [shape: bf16[36,32], index: 1, kind: input, shape index: {}]   ;;  %s2667_s2 = inlined_call_operand.vmem [shape: bf16[72,32], index: 2, kind: input, shape index: {}]   ;;  %s2668_s3 = inlined_call_operand.vmem [shape: f32[2,8,256], index: 3, kind: output, shape index: {}]  }
   0x1 LB: > { %s1563_s13 = sadd.s32 4294967295, %s2007_s12   ;;  %p1567_p0 = scmp.ge.s32.totalorder %s2007_s12, 1  ;;  %s2007_s12 = sphi %s2044_s12, %s13_s12  }
   0x2   : > { %p137_p1 = scmp.lt.s32.totalorder %s2007_s12, 3 }
   0x4   : > { %p138_p2 = pnand %p1567_p0, %p137_p1 }
   0x5   : > { %p2052_p3 = scmp.lt.s32.totalorder (!%p138_p2), %s1563_s13, 1  ;;  %s2010_s19 = smov (!%p138_p2), 124  }
   0x6   : > { %141 = sbr.rel (%p138_p2) target bundleno = 1029 (0x405), region = 32  ;;  %s2011_s20 = smov (!%p138_p2), 4  }
   0x7   : > { %s2012_s21 = smov (!%p138_p2), 8   ;;  %s2013_s22 = smov (!%p138_p2), 12  }
   0x8   : > { %s2014_s25 = smov (!%p138_p2), 16   ;;  %s2015_s28 = smov (!%p138_p2), 20  }
   0x9   : > { %s2016_s4 = smov (!%p138_p2), 24   ;;  %s2017_s5 = smov (!%p138_p2), 28  }
   0xa   : > { %s2018_s6 = smov (!%p138_p2), 32   ;;  %s2019_s9 = smov (!%p138_p2), 40  }
   0xb   : > { %vm237_vm0 = vcmask 31744   ;;  %vm239_vm1 = vcmask 25600   ;;  %v2009_v0 = vmov 0.0   ;;  %s2671_s13 = smov (!%p2052_p3, %s1563_s13), 1  ;;  %vm605_vm2 = vcmask 64512   ;;  %s2020_s16 = smov 48  }
   0xc   : > { %245 = vst.msk [vmem:[#allocation2 + $0x30] sm:$0xff] %vm237_vm0, %v2009_v0  ;;  %238 = vst.msk [vmem:[#allocation2] sm:$0xff] %vm237_vm0, %v2009_v0  ;;  %s1598_s15 = sshll.u32 %s2671_s13, 7  ;;  %v1993_v61 = vld [vmem:[%s2666_s1 + $0x10] ss:$0 sps:$4 sm:$0x33]  }
   0xd   : > { %246 = vst.msk [vmem:[#allocation2 + $0x38] sm:$0x3] %vm239_vm1, %v2009_v0  ;;  %240 = vst.msk [vmem:[#allocation2 + $0x8] sm:$0x3] %vm239_vm1, %v2009_v0  ;;  %s165_s18 = scalar_lea.vmem %s2665_s0, %s1598_s15  ;;  %vm705_vm3 = vcmask 1041408   ;;  %vm614_vm4 = vcmask 97280  }
   0xe   : > { %241 = vst.msk [vmem:[#allocation2 + $0x10] sm:$0xff] %vm237_vm0, %v2009_v0  ;;  %243 = vst.msk [vmem:[#allocation2 + $0x20] sm:$0xff] %vm237_vm0, %v2009_v0  ;;  %v174_v1 = vld [vmem:[%s165_s18 + $0x20] sm:$0xff]  ;;  %v1574_v2 = vld [vmem:[%s165_s18 + $0x28] sm:$0xff]  ;;  %1648 = vmatprep.subr.msk.bf16.mxu0 %vm705_vm3, %v1993_v61  ;;  %v707_v62 = vsel %vm705_vm3, %v1993_v61, 0  ;;  %vm623_vm5 = vcmask 130048  }
   0xf   : > { %242 = vst.msk [vmem:[#allocation2 + $0x18] sm:$0x3] %vm239_vm1, %v2009_v0  ;;  %244 = vst.msk [vmem:[#allocation2 + $0x28] sm:$0x3] %vm239_vm1, %v2009_v0  ;;  %v172_v3 = vld [vmem:[%s165_s18] sm:$0xff]  ;;  %v191_v4 = vmax.f32 %v174_v1, %v1574_v2  ;;  %v1572_v5 = vld [vmem:[%s165_s18 + $0x8] sm:$0xff]  ;;  %1617 = vmatpush3.bf16.msra.mxu0 %v707_v62 }
  0x10   : > { %247 = vst.msk [vmem:[#allocation2 + $0x40] sm:$0xff] %vm237_vm0, %v2009_v0  ;;  %249 = vst.msk [vmem:[#allocation2 + $0x50] sm:$0xff] %vm237_vm0, %v2009_v0  ;;  %v175_v6 = vld [vmem:[%s165_s18 + $0x30] sm:$0xff]  ;;  %v1575_v7 = vld [vmem:[%s165_s18 + $0x38] sm:$0xff]  ;;  %v189_v8 = vmax.f32 %v172_v3, %v1572_v5  ;;  %vm632_vm6 = vcmask 162816   ;;  %vm641_vm7 = vcmask 195584  }
  0x11   : > { %248 = vst.msk [vmem:[#allocation2 + $0x48] sm:$0x3] %vm239_vm1, %v2009_v0  ;;  %250 = vst.msk [vmem:[#allocation2 + $0x58] sm:$0x3] %vm239_vm1, %v2009_v0  ;;  %v173_v9 = vld [vmem:[%s165_s18 + $0x10] sm:$0xff]  ;;  %v1573_v10 = vld [vmem:[%s165_s18 + $0x18] sm:$0xff]  ;;  %209 = vrot.lane.b32.xlu1 %v191_v4, %s2010_s19  ;;  %v192_v11 = vmax.f32 %v175_v6, %v1575_v7 }
  0x12   : > { %251 = vst.msk [vmem:[#allocation2 + $0x60] sm:$0xff] %vm237_vm0, %v2009_v0  ;;  %253 = vst.msk [vmem:[#allocation2 + $0x70] sm:$0xff] %vm237_vm0, %v2009_v0  ;;  %205 = vrot.lane.b32.xlu0 %v189_v8, %s2010_s19  ;;  %v190_v12 = vmax.f32 %v173_v9, %v1573_v10  ;;  %v177_v13 = vld [vmem:[%s165_s18 + $0x50] sm:$0xff]  ;;  %v1577_v14 = vld [vmem:[%s165_s18 + $0x58] sm:$0xff]  ;;  %vm650_vm8 = vcmask 228352   ;;  %vm659_vm9 = vcmask 261120  }
  0x13   : > { %252 = vst.msk [vmem:[#allocation2 + $0x68] sm:$0x3] %vm239_vm1, %v2009_v0  ;;  %254 = vst.msk [vmem:[#allocation2 + $0x78] sm:$0x3] %vm239_vm1, %v2009_v0  ;;  %v176_v15 = vld [vmem:[%s165_s18 + $0x40] sm:$0xff]  ;;  %v1576_v16 = vld [vmem:[%s165_s18 + $0x48] sm:$0xff]  ;;  %v194_v17 = vmax.f32 %v177_v13, %v1577_v14 }
  0x14   : > { %255 = vst.msk [vmem:[#allocation2 + $0x80] sm:$0xff] %vm237_vm0, %v2009_v0  ;;  %257 = vst.msk [vmem:[#allocation2 + $0x90] sm:$0xff] %vm237_vm0, %v2009_v0  ;;  %v193_v18 = vmax.f32 %v176_v15, %v1576_v16  ;;  %v179_v19 = vld [vmem:[%s165_s18 + $0x70] sm:$0xff]  ;;  %v1579_v20 = vld [vmem:[%s165_s18 + $0x78] sm:$0xff]  ;;  %vm692_vm10 = vcmask 293888   ;;  %vm783_vm11 = vcmask 58368  }
  0x15   : > { %256 = vst.msk [vmem:[#allocation2 + $0x88] sm:$0x3] %vm239_vm1, %v2009_v0  ;;  %258 = vst.msk [vmem:[#allocation2 + $0x98] sm:$0x3] %vm239_vm1, %v2009_v0  ;;  %211 = vrot.lane.b32.xlu1 %v192_v11, %s2010_s19  ;;  %v178_v21 = vld [vmem:[%s165_s18 + $0x60] sm:$0xff]  ;;  %v1578_v22 = vld [vmem:[%s165_s18 + $0x68] sm:$0xff]  ;;  %v196_v23 = vmax.f32 %v179_v19, %v1579_v20 }
  0x16   : > { %207 = vrot.lane.b32.xlu0 %v190_v12, %s2010_s19  ;;  %v195_v24 = vmax.f32 %v178_v21, %v1578_v22  ;;  %782 = vst.msk [vmem:[#allocation3] sm:$0xff] %vm605_vm2, %v2009_v0  ;;  %785 = vst.msk [vmem:[#allocation3 + $0x10] sm:$0xff] %vm605_vm2, %v2009_v0  ;;  %v276_v35 = vld [vmem:[#allocation2 + $0x1] sm:$0xff]  ;;  %vm1273_vm12 = vcmask 1043456   ;;  %s2022_s23 = smov 64   ;;  %vm1173_vm13 = vcmask 326656  }
  0x17   : > { %787 = vst.msk [vmem:[#allocation3 + $0x20] sm:$0xff] %vm605_vm2, %v2009_v0  ;;  %789 = vst.msk [vmem:[#allocation3 + $0x30] sm:$0xff] %vm605_vm2, %v2009_v0  ;;  %v284_v41 = vld [vmem:[#allocation2 + $0x2] sm:$0xff]  ;;  %vm1182_vm14 = vcmask 392192   ;;  %vm1191_vm15 = vcmask 457728   ;;  %vm1260_vm1 = vcmask 588800  }
  0x18   : > { %791 = vst.msk [vmem:[#allocation3 + $0x40] sm:$0xff] %vm605_vm2, %v2009_v0  ;;  %793 = vst.msk [vmem:[#allocation3 + $0x50] sm:$0xff] %vm605_vm2, %v2009_v0  ;;  %v1994_v3 = vld [vmem:[%s2666_s1 + $0x8] sm:$0xff]   ;;  %v1995_v7 = vld [vmem:[%s2666_s1] sm:$0xff]   ;;  %vm1359_vm3 = vcmask 1041409   ;;  %s2023_s26 = smov 96  }
  0x19   : > { %215 = vrot.lane.b32.xlu1 %v194_v17, %s2010_s19  ;;  %795 = vst.msk [vmem:[#allocation3 + $0x60] sm:$0xff] %vm605_vm2, %v2009_v0  ;;  %797 = vst.msk [vmem:[#allocation3 + $0x70] sm:$0xff] %vm605_vm2, %v2009_v0  ;;  %1618 = vmatprep.subr.bf16.mxu0 %v1994_v3 }
  0x1a   : > { %213 = vrot.lane.b32.xlu0 %v193_v18, %s2010_s19  ;;  %799 = vst.msk [vmem:[#allocation3 + $0x80] sm:$0xff] %vm605_vm2, %v2009_v0  ;;  %801 = vst.msk [vmem:[#allocation3 + $0x90] sm:$0xff] %vm605_vm2, %v2009_v0  ;;  %1619 = vmatpush3.bf16.msra.mxu0 %v1994_v3 }
  0x1b   : > { %1620 = vmatprep.subr.bf16.mxu0 %v1995_v7  ;;  %790 = vst.msk [vmem:[#allocation3 + $0x38] sm:$0x3] %vm783_vm11, %v2009_v0  ;;  %784 = vst.msk [vmem:[#allocation3 + $0x8] sm:$0x3] %vm783_vm11, %v2009_v0 }
  0x1c   : > { %786 = vst.msk [vmem:[#allocation3 + $0x18] sm:$0x3] %vm783_vm11, %v2009_v0  ;;  %788 = vst.msk [vmem:[#allocation3 + $0x28] sm:$0x3] %vm783_vm11, %v2009_v0 }
  0x1d   : > { %219 = vrot.lane.b32.xlu1 %v196_v23, %s2010_s19  ;;  %792 = vst.msk [vmem:[#allocation3 + $0x48] sm:$0x3] %vm783_vm11, %v2009_v0  ;;  %794 = vst.msk [vmem:[#allocation3 + $0x58] sm:$0x3] %vm783_vm11, %v2009_v0 }
  0x1e   : > { %217 = vrot.lane.b32.xlu0 %v195_v24, %s2010_s19  ;;  %1621 = vmatpush3.bf16.msra.mxu0 %v1995_v7  ;;  %796 = vst.msk [vmem:[#allocation3 + $0x68] sm:$0x3] %vm783_vm11, %v2009_v0  ;;  %798 = vst.msk [vmem:[#allocation3 + $0x78] sm:$0x3] %vm783_vm11, %v2009_v0  ;;  %s2021_s19 = smov 56  }
  0x1f   : > { %800 = vst.msk [vmem:[#allocation3 + $0x88] sm:$0x3] %vm783_vm11, %v2009_v0  ;;  %802 = vst.msk [vmem:[#allocation3 + $0x98] sm:$0x3] %vm783_vm11, %v2009_v0  ;;  %vm1398_vm11 = vcmask 523520  }
  0x83   : > { %v210_v25 = vpop.permute.xlu1 %209 }
  0x84   : > { %v231_v26 = vmax.f32 %v191_v4, %v210_v25  ;;  %v206_v27 = vpop.permute.xlu0 %205 }
  0x85   : > { %v229_v28 = vmax.f32 %v189_v8, %v206_v27 }
  0x86   : > { %262 = vst.msk [vmem:[#allocation2 + $0x31] sm:$0xff] %vm237_vm0, %v231_v26 }
  0x87   : > { %260 = vst.msk [vmem:[#allocation2 + $0x11] sm:$0xff] %vm237_vm0, %v229_v28  ;;  %v212_v29 = vpop.permute.xlu1 %211 }
  0x88   : > { %v232_v30 = vmax.f32 %v192_v11, %v212_v29  ;;  %v208_v31 = vpop.permute.xlu0 %207 }
  0x89   : > { %v230_v32 = vmax.f32 %v190_v12, %v208_v31  ;;  %v324_v31 = vld [vmem:[#allocation2 + $0x90] sm:$0xff] }
  0x8a   : > { %263 = vst.msk [vmem:[#allocation2 + $0x41] sm:$0xff] %vm237_vm0, %v232_v30 }
  0x8b   : > { %261 = vst.msk [vmem:[#allocation2 + $0x21] sm:$0xff] %vm237_vm0, %v230_v32  ;;  %v216_v33 = vpop.permute.xlu1 %215 }
  0x8c   : > { %v214_v34 = vpop.permute.xlu0 %213  ;;  %v234_v36 = vmax.f32 %v194_v17, %v216_v33  ;;  %v332_v33 = vld [vmem:[#allocation2 + $0x91] sm:$0xff] }
  0x8d   : > { %v233_v37 = vmax.f32 %v193_v18, %v214_v34  ;;  %v279_v43 = vld [vmem:[#allocation2 + $0x31] sm:$0xff] }
  0x8e   : > { %v277_v38 = vld [vmem:[#allocation2 + $0x11] sm:$0xff]  ;;  %265 = vst.msk [vmem:[#allocation2 + $0x61] sm:$0xff] %vm237_vm0, %v234_v36 }
  0x8f   : > { %264 = vst.msk [vmem:[#allocation2 + $0x51] sm:$0xff] %vm237_vm0, %v233_v37  ;;  %v1673_v39 = vpack.i.bf16 %v277_v38, %v276_v35  ;;  %v220_v40 = vpop.permute.xlu1 %219  ;;  %v285_v42 = vld [vmem:[#allocation2 + $0x12] sm:$0xff] }
  0x90   : > { %v236_v44 = vmax.f32 %v196_v23, %v220_v40  ;;  %v218_v45 = vpop.permute.xlu0 %217  ;;  %v1683_v48 = vpack.i.bf16 %v285_v42, %v284_v41  ;;  %v287_v52 = vld [vmem:[#allocation2 + $0x32] sm:$0xff] }
  0x91   : > { %1674 = vrot.lane.b32.xlu0 %v1673_v39, %s2011_s20  ;;  %v235_v46 = vmax.f32 %v195_v24, %v218_v45  ;;  %v2137_v53 = vld [vmem:[#allocation2 + $0x10] sm:$0xff]  ;;  %v2143_v57 = vld [vmem:[#allocation2 + $0x40] sm:$0xff] }
  0x92   : > { %v278_v47 = vld [vmem:[#allocation2 + $0x21] sm:$0xff]  ;;  %267 = vst.msk [vmem:[#allocation2 + $0x81] sm:$0xff] %vm237_vm0, %v236_v44  ;;  %v2141_v56 = vld [vmem:[#allocation2 + $0x30] sm:$0xff] }
  0x93   : > { %v1678_v49 = vpack.i.bf16 %v279_v43, %v278_v47  ;;  %266 = vst.msk [vmem:[#allocation2 + $0x71] sm:$0xff] %vm237_vm0, %v235_v46  ;;  %v2133_v50 = vld [vmem:[#allocation2 + $0x20] sm:$0xff]  ;;  %v1703_v58 = vpack.i.bf16 %v278_v47, %v277_v38  ;;  %v1698_v59 = vpack.i.bf16 %v2143_v57, %v2141_v56  ;;  %v340_v35 = vld [vmem:[#allocation2 + $0x92] sm:$0xff] }
  0x94   : > { %v286_v51 = vld [vmem:[#allocation2 + $0x22] sm:$0xff]  ;;  %v1693_v54 = vpack.i.bf16 %v2133_v50, %v2137_v53  ;;  %v1723_v4 = vpack.i.bf16 %v2141_v56, %v2133_v50 }
  0x95   : > { %1684 = vrot.lane.b32.xlu0 %v1683_v48, %s2012_s21  ;;  %1679 = vrot.lane.b32.xlu1 %v1678_v49, %s2011_s20  ;;  %v1688_v55 = vpack.i.bf16 %v287_v52, %v286_v51  ;;  %v303_v60 = vld [vmem:[#allocation2 + $0x41] sm:$0xff]  ;;  %v1713_v63 = vpack.i.bf16 %v286_v51, %v285_v42 }
  0x96   : > { %v1708_v1 = vpack.i.bf16 %v303_v60, %v279_v43  ;;  %v311_v2 = vld [vmem:[#allocation2 + $0x42] sm:$0xff]  ;;  %v2161_v6 = vld [vmem:[#allocation2 + $0x50] sm:$0xff] }
  0x97   : > { %v1718_v5 = vpack.i.bf16 %v311_v2, %v287_v52  ;;  %v1728_v8 = vpack.i.bf16 %v2161_v6, %v2143_v57  ;;  %v328_v9 = vld [vmem:[#allocation2 + $0x51] sm:$0xff]  ;;  %v282_v14 = vld [vmem:[#allocation2 + $0x61] sm:$0xff] }
  0x98   : > { %v1738_v10 = vpack.i.bf16 %v328_v9, %v303_v60  ;;  %v336_v11 = vld [vmem:[#allocation2 + $0x52] sm:$0xff]  ;;  %v2176_v16 = vld [vmem:[#allocation2 + $0x60] sm:$0xff]  ;;  %v1783_v23 = vpack.i.bf16 %v282_v14, %v328_v9 }
  0x99   : > { %1694 = vrot.lane.b32.xlu0 %v1693_v54, %s2013_s22  ;;  %1689 = vrot.lane.b32.xlu1 %v1688_v55, %s2012_s21  ;;  %v1753_v13 = vpack.i.bf16 %v336_v11, %v311_v2  ;;  %v290_v18 = vld [vmem:[#allocation2 + $0x62] sm:$0xff]  ;;  %v1773_v19 = vpack.i.bf16 %v2176_v16, %v2161_v6 }
  0x9a   : > { %v283_v12 = vld [vmem:[#allocation2 + $0x71] sm:$0xff]  ;;  %v299_v22 = vld [vmem:[#allocation2 + $0x80] sm:$0xff]  ;;  %v1793_v26 = vpack.i.bf16 %v290_v18, %v336_v11 }
  0x9b   : > { %v1758_v15 = vpack.i.bf16 %v283_v12, %v282_v14  ;;  %v291_v17 = vld [vmem:[#allocation2 + $0x72] sm:$0xff]  ;;  %v307_v25 = vld [vmem:[#allocation2 + $0x81] sm:$0xff]  ;;  %v1808_v32 = vpack.i.bf16 %v324_v31, %v299_v22 }
  0x9c   : > { %v1768_v20 = vpack.i.bf16 %v291_v17, %v290_v18  ;;  %v2182_v21 = vld [vmem:[#allocation2 + $0x70] sm:$0xff]  ;;  %v1788_v27 = vpack.i.bf16 %v307_v25, %v283_v12  ;;  %v315_v28 = vld [vmem:[#allocation2 + $0x82] sm:$0xff]  ;;  %v1818_v34 = vpack.i.bf16 %v332_v33, %v307_v25 }
  0x9d   : > { %1704 = vrot.lane.b32.xlu0 %v1703_v58, %s2014_s25  ;;  %1699 = vrot.lane.b32.xlu1 %v1698_v59, %s2013_s22  ;;  %v1778_v24 = vpack.i.bf16 %v299_v22, %v2182_v21  ;;  %v1803_v29 = vpack.i.bf16 %v2182_v21, %v2176_v16  ;;  %v1798_v30 = vpack.i.bf16 %v315_v28, %v291_v17  ;;  %v268_v48 = vld [vmem:[#allocation2] sm:$0xff] }
  0x9e   : > { %v1828_v36 = vpack.i.bf16 %v340_v35, %v315_v28 }
  0xa1   : > { %1714 = vrot.lane.b32.xlu0 %v1713_v63, %s2015_s28  ;;  %1709 = vrot.lane.b32.xlu1 %v1708_v1, %s2014_s25 }
  0xa5   : > { %1724 = vrot.lane.b32.xlu0 %v1723_v4, %s2016_s4  ;;  %1719 = vrot.lane.b32.xlu1 %v1718_v5, %s2015_s28 }
  0xa9   : > { %1734 = vrot.lane.b32.xlu0 %v1678_v49, %s2017_s5  ;;  %1729 = vrot.lane.b32.xlu1 %v1728_v8, %s2016_s4 }
  0xad   : > { %1744 = vrot.lane.b32.xlu0 %v1688_v55, %s2018_s6  ;;  %1739 = vrot.lane.b32.xlu1 %v1738_v10, %s2017_s5 }
  0xb1   : > { %1754 = vrot.lane.b32.xlu0 %v1753_v13, %s2018_s6  ;;  %1749 = vrot.lane.b32.xlu1 %v1738_v10, %s2011_s20 }
  0xb5   : > { %1764 = vrot.lane.b32.xlu0 %v1753_v13, %s2012_s21  ;;  %1759 = vrot.lane.b32.xlu1 %v1758_v15, %s2011_s20 }
  0xb9   : > { %1774 = vrot.lane.b32.xlu0 %v1773_v19, %s2013_s22  ;;  %1769 = vrot.lane.b32.xlu1 %v1768_v20, %s2012_s21 }
  0xbd   : > { %1784 = vrot.lane.b32.xlu0 %v1783_v23, %s2014_s25  ;;  %1779 = vrot.lane.b32.xlu1 %v1778_v24, %s2013_s22 }
  0xc1   : > { %1794 = vrot.lane.b32.xlu0 %v1793_v26, %s2015_s28  ;;  %1789 = vrot.lane.b32.xlu1 %v1788_v27, %s2014_s25 }
  0xc5   : > { %1804 = vrot.lane.b32.xlu0 %v1803_v29, %s2016_s4  ;;  %1799 = vrot.lane.b32.xlu1 %v1798_v30, %s2015_s28 }
  0xc9   : > { %1814 = vrot.lane.b32.xlu0 %v1758_v15, %s2017_s5  ;;  %1809 = vrot.lane.b32.xlu1 %v1808_v32, %s2016_s4 }
  0xcd   : > { %1824 = vrot.lane.b32.xlu0 %v1768_v20, %s2018_s6  ;;  %1819 = vrot.lane.b32.xlu1 %v1818_v34, %s2017_s5 }
  0xd1   : > { %1829 = vrot.lane.b32.xlu1 %v1828_v36, %s2018_s6 }
 0x103   : > { %v1675_v37 = vpop.permute.xlu0 %1674 }
 0x104   : > { %v1677_v44 = vunpack.i.h.bf16 %v1675_v37  ;;  %v1676_v45 = vunpack.i.l.bf16 %v1675_v37 }
 0x106   : > { %v598_v55 = vsel %vm237_vm0, %v2137_v53, %v1677_v44  ;;  %v597_v58 = vsel %vm237_vm0, %v268_v48, %v1676_v45 }
 0x107   : > { %v1680_v38 = vpop.permute.xlu1 %1679  ;;  %v1685_v39 = vpop.permute.xlu0 %1684 }
 0x108   : > { %v1682_v49 = vunpack.i.h.bf16 %v1680_v38  ;;  %v1681_v51 = vunpack.i.l.bf16 %v1680_v38  ;;  %v1687_v52 = vunpack.i.h.bf16 %v1685_v39  ;;  %v1686_v54 = vunpack.i.l.bf16 %v1685_v39 }
 0x10a   : > { %v600_v4 = vsel %vm237_vm0, %v2141_v56, %v1682_v49  ;;  %v599_v5 = vsel %vm237_vm0, %v2133_v50, %v1681_v51  ;;  %v606_v53 = vsel %vm605_vm2, %v597_v58, %v1686_v54  ;;  %v607_v9 = vsel %vm605_vm2, %v598_v55, %v1687_v52 }
 0x10b   : > { %v1690_v40 = vpop.permute.xlu1 %1689  ;;  %v1695_v41 = vpop.permute.xlu0 %1694 }
 0x10c   : > { %v1692_v59 = vunpack.i.h.bf16 %v1690_v40  ;;  %v1691_v60 = vunpack.i.l.bf16 %v1690_v40  ;;  %v1697_v63 = vunpack.i.h.bf16 %v1695_v41  ;;  %v1696_v1 = vunpack.i.l.bf16 %v1695_v41 }
 0x10e   : > { %v608_v12 = vsel %vm605_vm2, %v599_v5, %v1691_v60  ;;  %v609_v13 = vsel %vm605_vm2, %v600_v4, %v1692_v59  ;;  %v615_v18 = vsel %vm614_vm4, %v606_v53, %v1696_v1  ;;  %v616_v50 = vsel %vm614_vm4, %v607_v9, %v1697_v63 }
 0x10f   : > { %v1700_v42 = vpop.permute.xlu1 %1699  ;;  %v1705_v43 = vpop.permute.xlu0 %1704 }
 0x110   : > { %v1702_v2 = vunpack.i.h.bf16 %v1700_v42  ;;  %v1701_v3 = vunpack.i.l.bf16 %v1700_v42  ;;  %v1707_v7 = vunpack.i.h.bf16 %v1705_v43  ;;  %v1706_v8 = vunpack.i.l.bf16 %v1705_v43 }
 0x112   : > { %v617_v19 = vsel %vm614_vm4, %v608_v12, %v1701_v3  ;;  %v618_v20 = vsel %vm614_vm4, %v609_v13, %v1702_v2  ;;  %v624_v22 = vsel %vm623_vm5, %v615_v18, %v1706_v8  ;;  %v625_v23 = vsel %vm623_vm5, %v616_v50, %v1707_v7 }
 0x113   : > { %v2200_v46 = vpop.permute.xlu1 %1709  ;;  %v1715_v47 = vpop.permute.xlu0 %1714 }
 0x114   : > { %v1717_v10 = vunpack.i.h.bf16 %v1715_v47  ;;  %v1716_v11 = vunpack.i.l.bf16 %v1715_v47  ;;  %v1712_v26 = vunpack.i.h.bf16 %v2200_v46  ;;  %v1711_v27 = vunpack.i.l.bf16 %v2200_v46 }
 0x116   : > { %v633_v28 = vsel %vm632_vm6, %v624_v22, %v1716_v11  ;;  %v634_v29 = vsel %vm632_vm6, %v625_v23, %v1717_v10  ;;  %v626_v44 = vsel %vm623_vm5, %v617_v19, %v1711_v27  ;;  %v627_v45 = vsel %vm623_vm5, %v618_v20, %v1712_v26 }
 0x117   : > { %v1720_v61 = vpop.permute.xlu1 %1719  ;;  %v1725_v62 = vpop.permute.xlu0 %1724 }
 0x118   : > { %v1727_v14 = vunpack.i.h.bf16 %v1725_v62  ;;  %v1726_v15 = vunpack.i.l.bf16 %v1725_v62  ;;  %v1722_v30 = vunpack.i.h.bf16 %v1720_v61  ;;  %v1721_v31 = vunpack.i.l.bf16 %v1720_v61 }
 0x11a   : > { %v642_v32 = vsel %vm641_vm7, %v633_v28, %v1726_v15  ;;  %v643_v33 = vsel %vm641_vm7, %v634_v29, %v1727_v14  ;;  %v635_v48 = vsel %vm632_vm6, %v626_v44, %v1721_v31  ;;  %v636_v49 = vsel %vm632_vm6, %v627_v45, %v1722_v30 }
 0x11b   : > { %v1730_v17 = vpop.permute.xlu1 %1729  ;;  %v1735_v56 = vpop.permute.xlu0 %1734 }
 0x11c   : > { %v1737_v24 = vunpack.i.h.bf16 %v1735_v56  ;;  %v1736_v25 = vunpack.i.l.bf16 %v1735_v56  ;;  %v1732_v36 = vunpack.i.h.bf16 %v1730_v17  ;;  %v1731_v37 = vunpack.i.l.bf16 %v1730_v17 }
 0x11e   : > { %v651_v42 = vsel %vm650_vm8, %v642_v32, %v1736_v25  ;;  %v652_v43 = vsel %vm650_vm8, %v643_v33, %v1737_v24  ;;  %v645_v55 = vsel %vm641_vm7, %v636_v49, %v1732_v36  ;;  %v644_v58 = vsel %vm641_vm7, %v635_v48, %v1731_v37 }
 0x11f   : > { %v1740_v34 = vpop.permute.xlu1 %1739  ;;  %v1745_v35 = vpop.permute.xlu0 %1744 }
 0x120   : > { %v1747_v38 = vunpack.i.h.bf16 %v1745_v35  ;;  %v1746_v39 = vunpack.i.l.bf16 %v1745_v35  ;;  %v1742_v40 = vunpack.i.h.bf16 %v1740_v34  ;;  %v1741_v41 = vunpack.i.l.bf16 %v1740_v34 }
 0x122   : > { %v660_v46 = vsel %vm659_vm9, %v651_v42, %v1746_v39  ;;  %v661_v47 = vsel %vm659_vm9, %v652_v43, %v1747_v38  ;;  %v653_v61 = vsel %vm650_vm8, %v644_v58, %v1741_v41  ;;  %v654_v62 = vsel %vm650_vm8, %v645_v55, %v1742_v40 }
 0x123   : > { %v1750_v51 = vpop.permute.xlu1 %1749  ;;  %v1755_v52 = vpop.permute.xlu0 %1754  ;;  %v668_v54 = vpack.c.bf16 %v661_v47, %v660_v46 }
 0x124   : > { %v1757_v59 = vunpack.i.h.bf16 %v1755_v52  ;;  %v1756_v60 = vunpack.i.l.bf16 %v1755_v52  ;;  %v1752_v9 = vunpack.i.h.bf16 %v1750_v51  ;;  %v1751_v10 = vunpack.i.l.bf16 %v1750_v51 }
 0x125   : > { %1622 = vmatprep.mubr.msk.bf16.mxu0 %vm692_vm10, %v668_v54 }
 0x126   : > { %v663_v63 = vsel %vm659_vm9, %v654_v62, %v1757_v59  ;;  %v662_v1 = vsel %vm659_vm9, %v653_v61, %v1756_v60  ;;  %v601_v56 = vsel %vm237_vm0, %v2143_v57, %v1751_v10  ;;  %v602_v18 = vsel %vm237_vm0, %v2161_v6, %v1752_v9 }
 0x127   : > { %v669_v2 = vpack.c.bf16 %v663_v63, %v662_v1  ;;  %v1760_v3 = vpop.permute.xlu1 %1759  ;;  %v1765_v4 = vpop.permute.xlu0 %1764 }
 0x128   : > { %v1762_v13 = vunpack.i.h.bf16 %v1760_v3  ;;  %v1761_v14 = vunpack.i.l.bf16 %v1760_v3  ;;  %v1767_v15 = vunpack.i.h.bf16 %v1765_v4  ;;  %v1766_v17 = vunpack.i.l.bf16 %v1765_v4 }
 0x129   : > { %1623 = vmatmul.mubr.msk.bf16.vlgmr.msra.gmra.mxu0 %vm692_vm10, %v669_v2 }
 0x12a   : > { %v603_v27 = vsel %vm237_vm0, %v2176_v16, %v1761_v14  ;;  %v604_v28 = vsel %vm237_vm0, %v2182_v21, %v1762_v13  ;;  %v611_v57 = vsel %vm605_vm2, %v602_v18, %v1767_v15  ;;  %v610_v6 = vsel %vm605_vm2, %v601_v56, %v1766_v17 }
 0x12b   : > { %v1770_v5 = vpop.permute.xlu1 %1769  ;;  %v1775_v7 = vpop.permute.xlu0 %1774  ;;  %vm1200_vm0 = vcmask 523264  }
 0x12c   : > { %v1772_v50 = vunpack.i.h.bf16 %v1770_v5  ;;  %v1771_v19 = vunpack.i.l.bf16 %v1770_v5  ;;  %v1777_v23 = vunpack.i.h.bf16 %v1775_v7  ;;  %v1776_v24 = vunpack.i.l.bf16 %v1775_v7 }
 0x12e   : > { %v612_v33 = vsel %vm605_vm2, %v603_v27, %v1771_v19  ;;  %v613_v34 = vsel %vm605_vm2, %v604_v28, %v1772_v50  ;;  %v619_v16 = vsel %vm614_vm4, %v610_v6, %v1776_v24  ;;  %v620_v21 = vsel %vm614_vm4, %v611_v57, %v1777_v23  ;;  %v820_v28 = vld [vmem:[#allocation3 + $0x1] sm:$0xff] }
 0x12f   : > { %v1780_v8 = vpop.permute.xlu1 %1779  ;;  %v1785_v53 = vpop.permute.xlu0 %1784  ;;  %v828_v57 = vld [vmem:[#allocation3 + $0x2] sm:$0xff] }
 0x130   : > { %v1782_v25 = vunpack.i.h.bf16 %v1780_v8  ;;  %v1781_v26 = vunpack.i.l.bf16 %v1780_v8  ;;  %v1787_v29 = vunpack.i.h.bf16 %v1785_v53  ;;  %v1786_v30 = vunpack.i.l.bf16 %v1785_v53 }
 0x132   : > { %v621_v39 = vsel %vm614_vm4, %v612_v33, %v1781_v26  ;;  %v622_v40 = vsel %vm614_vm4, %v613_v34, %v1782_v25  ;;  %v628_v41 = vsel %vm623_vm5, %v619_v16, %v1786_v30  ;;  %v629_v42 = vsel %vm623_vm5, %v620_v21, %v1787_v29 }
 0x133   : > { %v1790_v11 = vpop.permute.xlu1 %1789  ;;  %v1795_v12 = vpop.permute.xlu0 %1794  ;;  %vm1362_vm4 = vcmask 1042434  }
 0x134   : > { %v1797_v31 = vunpack.i.h.bf16 %v1795_v12  ;;  %v1796_v32 = vunpack.i.l.bf16 %v1795_v12  ;;  %v1792_v45 = vunpack.i.h.bf16 %v1790_v11  ;;  %v1791_v46 = vunpack.i.l.bf16 %v1790_v11 }
 0x136   : > { %v637_v47 = vsel %vm632_vm6, %v628_v41, %v1796_v32  ;;  %v638_v48 = vsel %vm632_vm6, %v629_v42, %v1797_v31  ;;  %v630_v4 = vsel %vm623_vm5, %v621_v39, %v1791_v46  ;;  %v631_v5 = vsel %vm623_vm5, %v622_v40, %v1792_v45 }
 0x137   : > { %v1800_v20 = vpop.permute.xlu1 %1799  ;;  %v1805_v22 = vpop.permute.xlu0 %1804 }
 0x138   : > { %v1807_v35 = vunpack.i.h.bf16 %v1805_v22  ;;  %v1806_v36 = vunpack.i.l.bf16 %v1805_v22  ;;  %v1802_v49 = vunpack.i.h.bf16 %v1800_v20  ;;  %v1801_v51 = vunpack.i.l.bf16 %v1800_v20 }
 0x13a   : > { %v646_v52 = vsel %vm641_vm7, %v637_v47, %v1806_v36  ;;  %v647_v54 = vsel %vm641_vm7, %v638_v48, %v1807_v35  ;;  %v639_v53 = vsel %vm632_vm6, %v630_v4, %v1801_v51  ;;  %v640_v9 = vsel %vm632_vm6, %v631_v5, %v1802_v49  ;;  %v1997_v47 = vld [vmem:[%s2667_s2 + $0x18] sm:$0xff]   ;;  %v1998_v51 = vld [vmem:[%s2667_s2 + $0x10] sm:$0xff]  }
 0x13b   : > { %v1810_v37 = vpop.permute.xlu1 %1809  ;;  %v1815_v38 = vpop.permute.xlu0 %1814  ;;  %vm1368_vm6 = vcmask 1044484  }
 0x13c   : > { %v1817_v43 = vunpack.i.h.bf16 %v1815_v38  ;;  %v1816_v44 = vunpack.i.l.bf16 %v1815_v38  ;;  %v1812_v59 = vunpack.i.h.bf16 %v1810_v37  ;;  %v1811_v60 = vunpack.i.l.bf16 %v1810_v37 }
 0x13e   : > { %v655_v63 = vsel %vm650_vm8, %v646_v52, %v1816_v44  ;;  %v656_v1 = vsel %vm650_vm8, %v647_v54, %v1817_v43  ;;  %v648_v12 = vsel %vm641_vm7, %v639_v53, %v1811_v60  ;;  %v649_v13 = vsel %vm641_vm7, %v640_v9, %v1812_v59  ;;  %v1996_v43 = vld [vmem:[%s2667_s2 + $0x20] ss:$0 sps:$4 sm:$0xff]  }
 0x13f   : > { %v1820_v55 = vpop.permute.xlu1 %1819  ;;  %v1825_v58 = vpop.permute.xlu0 %1824  ;;  %1649 = vmatprep.subr.msk.bf16.mxu1 %vm1273_vm12, %v1996_v43  ;;  %v1275_v45 = vsel %vm1273_vm12, %v1996_v43, 0  ;;  %vm1417_vm12 = vcmask 785920  }
 0x140   : > { %v1827_v61 = vunpack.i.h.bf16 %v1825_v58  ;;  %v1826_v62 = vunpack.i.l.bf16 %v1825_v58  ;;  %v1822_v2 = vunpack.i.h.bf16 %v1820_v55  ;;  %v1821_v3 = vunpack.i.l.bf16 %v1820_v55  ;;  %1631 = vmatpush3.bf16.msra.mxu1 %v1275_v45 }
 0x141   : > { %1632 = vmatprep.subr.bf16.mxu1 %v1997_v47 }
 0x142   : > { %v664_v7 = vsel %vm659_vm9, %v655_v63, %v1826_v62  ;;  %v665_v8 = vsel %vm659_vm9, %v656_v1, %v1827_v61  ;;  %v657_v17 = vsel %vm650_vm8, %v648_v12, %v1821_v3  ;;  %v658_v56 = vsel %vm650_vm8, %v649_v13, %v1822_v2  ;;  %v1999_v61 = vld [vmem:[%s2667_s2 + $0x8] sm:$0xff]   ;;  %v2000_v3 = vld [vmem:[%s2667_s2] sm:$0xff]  }
 0x143   : > { %v670_v10 = vpack.c.bf16 %v665_v8, %v664_v7  ;;  %v1830_v11 = vpop.permute.xlu1 %1829  ;;  %vm1374_vm8 = vcmask 1046534  }
 0x144   : > { %v1832_v14 = vunpack.i.h.bf16 %v1830_v11  ;;  %v1831_v15 = vunpack.i.l.bf16 %v1830_v11  ;;  %1633 = vmatpush3.bf16.msra.mxu1 %v1997_v47 }
 0x145   : > { %1626 = vmatprep.mubr.msk.bf16.mxu0 %vm692_vm10, %v670_v10  ;;  %1634 = vmatprep.subr.bf16.mxu1 %v1998_v51 }
 0x146   : > { %v666_v18 = vsel %vm659_vm9, %v657_v17, %v1831_v15  ;;  %v667_v50 = vsel %vm659_vm9, %v658_v56, %v1832_v14 }
 0x147   : > { %v671_v19 = vpack.c.bf16 %v667_v50, %v666_v18 }
 0x148   : > { %1635 = vmatpush3.bf16.msra.mxu1 %v1998_v51 }
 0x149   : > { %1627 = vmatmul.mubr.msk.bf16.gmra.mxu0 %vm692_vm10, %v671_v19  ;;  %1636 = vmatprep.subr.bf16.mxu1 %v1999_v61  ;;  %vm1377_vm10 = vcmask 1047559  }
 0x14c   : > { %1637 = vmatpush3.bf16.msra.mxu1 %v1999_v61 }
 0x14d   : > { %1638 = vmatprep.subr.bf16.mxu1 %v2000_v3 }
 0x150   : > { %1639 = vmatpush3.bf16.msra.mxu1 %v2000_v3 }
 0x1e9   : > { %v2289_v20 = vpop.f32.mrf.mxu0 }
 0x1ea   : > { %v776_v22 = vmax.f32 %v2289_v20, 0.0 }
 0x1eb   : > { %v2292_v23 = vpop.f32.mrf.mxu0 }
 0x1ec   : > { %806 = vst.msk [vmem:[#allocation3 + $0x31] sm:$0xff] %vm605_vm2, %v776_v22  ;;  %v774_v24 = vmax.f32 %v2292_v23, 0.0 }
 0x1ed   : > { %v2298_v25 = vpop.f32.mrf.mxu0 }
 0x1ee   : > { %804 = vst.msk [vmem:[#allocation3 + $0x11] sm:$0xff] %vm605_vm2, %v774_v24  ;;  %v777_v0 = vmax.f32 %v2298_v25, 0.0 }
 0x1ef   : > { %v2304_v26 = vpop.f32.mrf.mxu0 }
 0x1f0   : > { %807 = vst.msk [vmem:[#allocation3 + $0x41] sm:$0xff] %vm605_vm2, %v777_v0  ;;  %v775_v27 = vmax.f32 %v2304_v26, 0.0 }
 0x1f2   : > { %805 = vst.msk [vmem:[#allocation3 + $0x21] sm:$0xff] %vm605_vm2, %v775_v27 }
 0x1f3   : > { %v2313_v6 = vld [vmem:[#allocation3 + $0x30] sm:$0xff] }
 0x1f4   : > { %v846_v36 = vld [vmem:[#allocation3 + $0x31] sm:$0xff] }
 0x1f5   : > { %v821_v29 = vld [vmem:[#allocation3 + $0x11] sm:$0xff] }
 0x1f6   : > { %v1833_v30 = vpack.i.bf16 %v821_v29, %v820_v28  ;;  %v829_v32 = vld [vmem:[#allocation3 + $0x12] sm:$0xff] }
 0x1f7   : > { %v2315_v31 = vld [vmem:[#allocation3 + $0x40] sm:$0xff]  ;;  %v1838_v35 = vpack.i.bf16 %v829_v32, %v828_v57  ;;  %v2327_v16 = vld [vmem:[#allocation3 + $0x10] sm:$0xff] }
 0x1f8   : > { %1834 = vrot.lane.b32.xlu0 %v1833_v30, %s2012_s21  ;;  %v1843_v33 = vpack.i.bf16 %v2315_v31, %v2313_v6  ;;  %v2320_v34 = vld [vmem:[#allocation3 + $0x41] sm:$0xff]  ;;  %v854_v40 = vld [vmem:[#allocation3 + $0x32] sm:$0xff] }
 0x1f9   : > { %v2323_v37 = vld [vmem:[#allocation3 + $0x20] sm:$0xff]  ;;  %v1848_v38 = vpack.i.bf16 %v2320_v34, %v846_v36 }
 0x1fa   : > { %1844 = vrot.lane.b32.xlu1 %v1843_v33, %s2016_s4  ;;  %v855_v21 = vld [vmem:[#allocation3 + $0x42] sm:$0xff]  ;;  %v1868_v39 = vpack.i.bf16 %v2323_v37, %v2327_v16  ;;  %v1883_v58 = vpack.i.bf16 %v2313_v6, %v2323_v37  ;;  %v868_v33 = vld [vmem:[#allocation3 + $0x90] sm:$0xff] }
 0x1fb   : > { %v845_v41 = vld [vmem:[#allocation3 + $0x21] sm:$0xff]  ;;  %v1853_v42 = vpack.i.bf16 %v855_v21, %v854_v40 }
 0x1fc   : > { %1839 = vrot.lane.b32.xlu0 %v1838_v35, %s2014_s25  ;;  %v1873_v44 = vpack.i.bf16 %v845_v41, %v821_v29  ;;  %v853_v46 = vld [vmem:[#allocation3 + $0x22] sm:$0xff]  ;;  %v1858_v48 = vpack.i.bf16 %v846_v36, %v845_v41 }
 0x1fd   : > { %v1878_v49 = vpack.i.bf16 %v853_v46, %v829_v32  ;;  %v1863_v52 = vpack.i.bf16 %v854_v40, %v853_v46 }
 0x1fe   : > { %1849 = vrot.lane.b32.xlu1 %v1848_v38, %s2018_s6  ;;  %v876_v38 = vld [vmem:[#allocation3 + $0x91] sm:$0xff] }
 0x200   : > { %1869 = vrot.lane.b32.xlu0 %v1868_v39, %s2016_s4  ;;  %v884_v39 = vld [vmem:[#allocation3 + $0x92] sm:$0xff] }
 0x202   : > { %1854 = vrot.lane.b32.xlu1 %v1853_v42, %s2019_s9 }
 0x204   : > { %1874 = vrot.lane.b32.xlu0 %v1873_v44, %s2018_s6 }
 0x206   : > { %1859 = vrot.lane.b32.xlu1 %v1858_v48, %s2012_s21 }
 0x208   : > { %1879 = vrot.lane.b32.xlu0 %v1878_v49, %s2019_s9 }
 0x209   : > { %v2346_v54 = vpop.f32.mrf.mxu0 }
 0x20a   : > { %v780_v55 = vmax.f32 %v2346_v54, 0.0  ;;  %1864 = vrot.lane.b32.xlu1 %v1863_v52, %s2014_s25 }
 0x20b   : > { %v2352_v59 = vpop.f32.mrf.mxu0 }
 0x20c   : > { %810 = vst.msk [vmem:[#allocation3 + $0x71] sm:$0xff] %vm605_vm2, %v780_v55  ;;  %v778_v60 = vmax.f32 %v2352_v59, 0.0  ;;  %1884 = vrot.lane.b32.xlu0 %v1883_v58, %s2020_s16  ;;  %v812_v58 = vld [vmem:[#allocation3] sm:$0xff] }
 0x20d   : > { %v2362_v62 = vpop.f32.mrf.mxu0 }
 0x20e   : > { %808 = vst.msk [vmem:[#allocation3 + $0x51] sm:$0xff] %vm605_vm2, %v778_v60  ;;  %v781_v63 = vmax.f32 %v2362_v62, 0.0 }
 0x20f   : > { %v2368_v1 = vpop.f32.mrf.mxu0 }
 0x210   : > { %811 = vst.msk [vmem:[#allocation3 + $0x81] sm:$0xff] %vm605_vm2, %v781_v63  ;;  %v779_v2 = vmax.f32 %v2368_v1, 0.0  ;;  %1889 = vrot.lane.b32.xlu0 %v1858_v48, %s2021_s19 }
 0x212   : > { %809 = vst.msk [vmem:[#allocation3 + $0x61] sm:$0xff] %vm605_vm2, %v779_v2 }
 0x213   : > { %v2397_v14 = vld [vmem:[#allocation3 + $0x70] sm:$0xff] }
 0x214   : > { %1894 = vrot.lane.b32.xlu0 %v1863_v52, %s2022_s23  ;;  %v850_v50 = vld [vmem:[#allocation3 + $0x71] sm:$0xff] }
 0x215   : > { %v880_v4 = vld [vmem:[#allocation3 + $0x52] sm:$0xff] }
 0x216   : > { %v2382_v5 = vld [vmem:[#allocation3 + $0x50] sm:$0xff]  ;;  %v1913_v7 = vpack.i.bf16 %v880_v4, %v855_v21 }
 0x217   : > { %v1898_v8 = vpack.i.bf16 %v2382_v5, %v2315_v31  ;;  %v872_v53 = vld [vmem:[#allocation3 + $0x51] sm:$0xff]  ;;  %v843_v12 = vld [vmem:[#allocation3 + $0x80] sm:$0xff] }
 0x218   : > { %1914 = vrot.lane.b32.xlu0 %v1913_v7, %s2022_s23  ;;  %v1903_v9 = vpack.i.bf16 %v872_v53, %v2320_v34  ;;  %v1923_v15 = vpack.i.bf16 %v843_v12, %v2397_v14  ;;  %v851_v56 = vld [vmem:[#allocation3 + $0x81] sm:$0xff]  ;;  %v858_v30 = vld [vmem:[#allocation3 + $0x72] sm:$0xff]  ;;  %v1938_v34 = vpack.i.bf16 %v868_v33, %v843_v12 }
 0x219   : > { %1899 = vrot.lane.b32.xlu1 %v1898_v8, %s2020_s16  ;;  %v2389_v10 = vld [vmem:[#allocation3 + $0x60] sm:$0xff]  ;;  %v1928_v19 = vpack.i.bf16 %v851_v56, %v850_v50  ;;  %v1953_v21 = vpack.i.bf16 %v876_v38, %v851_v56 }
 0x21a   : > { %v1958_v11 = vpack.i.bf16 %v2389_v10, %v2382_v5  ;;  %v849_v13 = vld [vmem:[#allocation3 + $0x61] sm:$0xff]  ;;  %v1973_v32 = vpack.i.bf16 %v2397_v14, %v2389_v10 }
 0x21b   : > { %v1963_v17 = vpack.i.bf16 %v849_v13, %v872_v53  ;;  %v857_v18 = vld [vmem:[#allocation3 + $0x62] sm:$0xff]  ;;  %v1978_v35 = vpack.i.bf16 %v850_v50, %v849_v13 }
 0x21c   : > { %1919 = vrot.lane.b32.xlu0 %v1913_v7, %s2014_s25  ;;  %v1968_v28 = vpack.i.bf16 %v857_v18, %v880_v4  ;;  %v859_v29 = vld [vmem:[#allocation3 + $0x82] sm:$0xff]  ;;  %v1983_v36 = vpack.i.bf16 %v858_v30, %v857_v18 }
 0x21d   : > { %1904 = vrot.lane.b32.xlu1 %v1903_v9, %s2021_s19  ;;  %v1933_v57 = vpack.i.bf16 %v859_v29, %v858_v30  ;;  %v1988_v40 = vpack.i.bf16 %v884_v39, %v859_v29 }
 0x220   : > { %1959 = vrot.lane.b32.xlu0 %v1958_v11, %s2016_s4 }
 0x221   : > { %1909 = vrot.lane.b32.xlu1 %v1903_v9, %s2012_s21 }
 0x224   : > { %1964 = vrot.lane.b32.xlu0 %v1963_v17, %s2018_s6 }
 0x225   : > { %1924 = vrot.lane.b32.xlu1 %v1923_v15, %s2016_s4 }
 0x228   : > { %1969 = vrot.lane.b32.xlu0 %v1968_v28, %s2019_s9 }
 0x229   : > { %1929 = vrot.lane.b32.xlu1 %v1928_v19, %s2018_s6 }
 0x22c   : > { %1974 = vrot.lane.b32.xlu0 %v1973_v32, %s2020_s16 }
 0x22d   : > { %1934 = vrot.lane.b32.xlu1 %v1933_v57, %s2019_s9 }
 0x230   : > { %1979 = vrot.lane.b32.xlu0 %v1978_v35, %s2021_s19 }
 0x231   : > { %1939 = vrot.lane.b32.xlu1 %v1938_v34, %s2020_s16 }
 0x234   : > { %1984 = vrot.lane.b32.xlu0 %v1983_v36, %s2022_s23 }
 0x235   : > { %1944 = vrot.lane.b32.xlu1 %v1978_v35, %s2012_s21  ;;  %s1599_s21 = sshll.u32 %s2671_s13, 4 }
 0x239   : > { %1949 = vrot.lane.b32.xlu1 %v1983_v36, %s2014_s25  ;;  %s2637_s25 = scalar_lea.vmem %s2668_s3, %s1599_s21 }
 0x23d   : > { %1954 = vrot.lane.b32.xlu1 %v1953_v21, %s2021_s19 }
 0x241   : > { %1989 = vrot.lane.b32.xlu1 %v1988_v40, %s2022_s23 }
 0x26a   : > { %v1835_v41 = vpop.permute.xlu0 %1834 }
 0x26b   : > { %v1837_v51 = vunpack.i.h.bf16 %v1835_v41  ;;  %v1836_v52 = vunpack.i.l.bf16 %v1835_v41 }
 0x26c   : > { %v1845_v42 = vpop.permute.xlu1 %1844 }
 0x26d   : > { %v1141_v3 = vsel %vm605_vm2, %v812_v58, %v1836_v52  ;;  %v1142_v4 = vsel %vm605_vm2, %v2327_v16, %v1837_v51  ;;  %v1847_v9 = vunpack.i.h.bf16 %v1845_v42  ;;  %v1846_v11 = vunpack.i.l.bf16 %v1845_v42 }
 0x26e   : > { %v1840_v43 = vpop.permute.xlu0 %1839 }
 0x26f   : > { %v1842_v7 = vunpack.i.h.bf16 %v1840_v43  ;;  %v1841_v8 = vunpack.i.l.bf16 %v1840_v43 }
 0x270   : > { %v2415_v44 = vpop.permute.xlu1 %1849 }
 0x271   : > { %v1149_v57 = vsel %vm623_vm5, %v1141_v3, %v1841_v8  ;;  %v1150_v16 = vsel %vm623_vm5, %v1142_v4, %v1842_v7  ;;  %v1852_v8 = vunpack.i.h.bf16 %v2415_v44 }
 0x272   : > { %v1870_v45 = vpop.permute.xlu0 %1869 }
 0x273   : > { %v1872_v12 = vunpack.i.h.bf16 %v1870_v45  ;;  %v1871_v13 = vunpack.i.l.bf16 %v1870_v45 }
 0x274   : > { %v2417_v46 = vpop.permute.xlu1 %1854 }
 0x275   : > { %v1158_v34 = vsel %vm641_vm7, %v1150_v16, %v1872_v12  ;;  %v1157_v35 = vsel %vm641_vm7, %v1149_v57, %v1871_v13 }
 0x276   : > { %v1875_v47 = vpop.permute.xlu0 %1874 }
 0x277   : > { %v1877_v15 = vunpack.i.h.bf16 %v1875_v47  ;;  %v1876_v17 = vunpack.i.l.bf16 %v1875_v47 }
 0x278   : > { %v1860_v48 = vpop.permute.xlu1 %1859 }
 0x279   : > { %v1862_v56 = vunpack.i.h.bf16 %v1860_v48  ;;  %v1861_v18 = vunpack.i.l.bf16 %v1860_v48  ;;  %v1165_v21 = vsel %vm659_vm9, %v1157_v35, %v1876_v17  ;;  %v1166_v39 = vsel %vm659_vm9, %v1158_v34, %v1877_v15 }
 0x27a   : > { %v1880_v49 = vpop.permute.xlu0 %1879 }
 0x27b   : > { %v1882_v50 = vunpack.i.h.bf16 %v1880_v49  ;;  %v1881_v19 = vunpack.i.l.bf16 %v1880_v49  ;;  %v1144_v40 = vsel %vm605_vm2, %v2313_v6, %v1862_v56  ;;  %v1143_v41 = vsel %vm605_vm2, %v2323_v37, %v1861_v18 }
 0x27c   : > { %v1865_v53 = vpop.permute.xlu1 %1864 }
 0x27d   : > { %v1867_v28 = vunpack.i.h.bf16 %v1865_v53  ;;  %v1866_v29 = vunpack.i.l.bf16 %v1865_v53  ;;  %v1174_v42 = vsel %vm1173_vm13, %v1165_v21, %v1881_v19  ;;  %v1175_v43 = vsel %vm1173_vm13, %v1166_v39, %v1882_v50 }
 0x27e   : > { %v1885_v61 = vpop.permute.xlu0 %1884  ;;  %v1851_v53 = vunpack.i.l.bf16 %v2415_v44 }
 0x27f   : > { %v1887_v32 = vunpack.i.h.bf16 %v1885_v61  ;;  %v1886_v33 = vunpack.i.l.bf16 %v1885_v61  ;;  %v1151_v45 = vsel %vm623_vm5, %v1143_v41, %v1866_v29  ;;  %v1152_v47 = vsel %vm623_vm5, %v1144_v40, %v1867_v28 }
 0x280   : > { %v1159_v37 = vsel %vm641_vm7, %v1151_v45, %v1846_v11  ;;  %v1160_v3 = vsel %vm641_vm7, %v1152_v47, %v1847_v9  ;;  %v1857_v9 = vunpack.i.h.bf16 %v2417_v46  ;;  %v1856_v11 = vunpack.i.l.bf16 %v2417_v46 }
 0x281   : > { %v1183_v49 = vsel %vm1182_vm14, %v1174_v42, %v1886_v33  ;;  %v1184_v51 = vsel %vm1182_vm14, %v1175_v43, %v1887_v32  ;;  %v1167_v17 = vsel %vm659_vm9, %v1159_v37, %v1851_v53  ;;  %v1168_v56 = vsel %vm659_vm9, %v1160_v3, %v1852_v8 }
 0x282   : > { %v1890_v30 = vpop.permute.xlu0 %1889  ;;  %v1176_v29 = vsel %vm1173_vm13, %v1167_v17, %v1856_v11  ;;  %v1177_v44 = vsel %vm1173_vm13, %v1168_v56, %v1857_v9 }
 0x283   : > { %v1892_v36 = vunpack.i.h.bf16 %v1890_v30  ;;  %v1891_v38 = vunpack.i.l.bf16 %v1890_v30 }
 0x285   : > { %v1192_v6 = vsel %vm1191_vm15, %v1183_v49, %v1891_v38  ;;  %v1193_v61 = vsel %vm1191_vm15, %v1184_v51, %v1892_v36 }
 0x286   : > { %v1895_v48 = vpop.permute.xlu0 %1894 }
 0x287   : > { %v1897_v52 = vunpack.i.h.bf16 %v1895_v48  ;;  %v1896_v58 = vunpack.i.l.bf16 %v1895_v48 }
 0x289   : > { %v1201_v4 = vsel %vm1200_vm0, %v1192_v6, %v1896_v58  ;;  %v1202_v7 = vsel %vm1200_vm0, %v1193_v61, %v1897_v52 }
 0x28a   : > { %v1915_v12 = vpop.permute.xlu0 %1914  ;;  %v1209_v15 = vpack.c.bf16 %v1202_v7, %v1201_v4 }
 0x28b   : > { %v1900_v13 = vpop.permute.xlu1 %1899  ;;  %v1917_v16 = vunpack.i.h.bf16 %v1915_v12  ;;  %v1916_v32 = vunpack.i.l.bf16 %v1915_v12 }
 0x28c   : > { %v1902_v18 = vunpack.i.h.bf16 %v1900_v13  ;;  %v1901_v50 = vunpack.i.l.bf16 %v1900_v13  ;;  %1640 = vmatprep.mubr.msk.bf16.mxu1 %vm1260_vm1, %v1209_v15 }
 0x28e   : > { %v1920_v28 = vpop.permute.xlu0 %1919  ;;  %v1186_v33 = vsel %vm1182_vm14, %v1177_v44, %v1902_v18  ;;  %v1185_v34 = vsel %vm1182_vm14, %v1176_v29, %v1901_v50 }
 0x28f   : > { %v1905_v19 = vpop.permute.xlu1 %1904  ;;  %v1922_v52 = vunpack.i.h.bf16 %v1920_v28  ;;  %v1921_v58 = vunpack.i.l.bf16 %v1920_v28 }
 0x290   : > { %v1907_v30 = vunpack.i.h.bf16 %v1905_v19  ;;  %v1906_v57 = vunpack.i.l.bf16 %v1905_v19 }
 0x292   : > { %v1194_v35 = vsel %vm1191_vm15, %v1185_v34, %v1906_v57  ;;  %v1195_v36 = vsel %vm1191_vm15, %v1186_v33, %v1907_v30  ;;  %v1960_v46 = vpop.permute.xlu0 %1959 }
 0x293   : > { %v1910_v38 = vpop.permute.xlu1 %1909  ;;  %v1203_v21 = vsel %vm1200_vm0, %v1194_v35, %v1916_v32  ;;  %v1204_v39 = vsel %vm1200_vm0, %v1195_v36, %v1917_v16  ;;  %v1962_v4 = vunpack.i.h.bf16 %v1960_v46  ;;  %v1961_v7 = vunpack.i.l.bf16 %v1960_v46 }
 0x294   : > { %v1210_v40 = vpack.c.bf16 %v1204_v39, %v1203_v21  ;;  %v1912_v43 = vunpack.i.h.bf16 %v1910_v38  ;;  %v1911_v45 = vunpack.i.l.bf16 %v1910_v38 }
 0x296   : > { %1641 = vmatmul.mubr.msk.bf16.vlgmr.msra.gmra.mxu1 %vm1260_vm1, %v1210_v40  ;;  %v1965_v42 = vpop.permute.xlu0 %1964  ;;  %v1145_v49 = vsel %vm605_vm2, %v2315_v31, %v1911_v45  ;;  %v1146_v51 = vsel %vm605_vm2, %v2382_v5, %v1912_v43 }
 0x297   : > { %v1925_v41 = vpop.permute.xlu1 %1924  ;;  %v1153_v37 = vsel %vm623_vm5, %v1145_v49, %v1921_v58  ;;  %v1154_v3 = vsel %vm623_vm5, %v1146_v51, %v1922_v52  ;;  %v1967_v8 = vunpack.i.h.bf16 %v1965_v42  ;;  %v1966_v53 = vunpack.i.l.bf16 %v1965_v42 }
 0x298   : > { %v1162_v12 = vsel %vm641_vm7, %v1154_v3, %v1962_v4  ;;  %v1161_v13 = vsel %vm641_vm7, %v1153_v37, %v1961_v7  ;;  %v1927_v45 = vunpack.i.h.bf16 %v1925_v41 }
 0x299   : > { %v1169_v11 = vsel %vm659_vm9, %v1161_v13, %v1966_v53  ;;  %v1170_v19 = vsel %vm659_vm9, %v1162_v12, %v1967_v8 }
 0x29a   : > { %v1970_v48 = vpop.permute.xlu0 %1969 }
 0x29b   : > { %v2460_v47 = vpop.permute.xlu1 %1929  ;;  %v1972_v31 = vunpack.i.h.bf16 %v1970_v48  ;;  %v1971_v15 = vunpack.i.l.bf16 %v1970_v48  ;;  %v1926_v48 = vunpack.i.l.bf16 %v1925_v41 }
 0x29c   : > { %v1932_v52 = vunpack.i.h.bf16 %v2460_v47  ;;  %v1931_v58 = vunpack.i.l.bf16 %v2460_v47 }
 0x29d   : > { %v1178_v28 = vsel %vm1173_vm13, %v1169_v11, %v1971_v15  ;;  %v1179_v29 = vsel %vm1173_vm13, %v1170_v19, %v1972_v31 }
 0x29e   : > { %v1975_v61 = vpop.permute.xlu0 %1974 }
 0x29f   : > { %v1935_v6 = vpop.permute.xlu1 %1934  ;;  %v1977_v56 = vunpack.i.h.bf16 %v1975_v61  ;;  %v1976_v18 = vunpack.i.l.bf16 %v1975_v61 }
 0x2a0   : > { %v1937_v3 = vunpack.i.h.bf16 %v1935_v6  ;;  %v1936_v4 = vunpack.i.l.bf16 %v1935_v6 }
 0x2a1   : > { %v1187_v57 = vsel %vm1182_vm14, %v1178_v28, %v1976_v18  ;;  %v1188_v16 = vsel %vm1182_vm14, %v1179_v29, %v1977_v56  ;;  %v1222_v29 = vlaneseq }
 0x2a2   : > { %v1980_v5 = vpop.permute.xlu0 %1979 }
 0x2a3   : > { %v1940_v17 = vpop.permute.xlu1 %1939  ;;  %v1982_v50 = vunpack.i.h.bf16 %v1980_v5  ;;  %v1981_v9 = vunpack.i.l.bf16 %v1980_v5 }
 0x2a4   : > { %v1942_v8 = vunpack.i.h.bf16 %v1940_v17  ;;  %v1941_v53 = vunpack.i.l.bf16 %v1940_v17 }
 0x2a5   : > { %v1196_v34 = vsel %vm1191_vm15, %v1187_v57, %v1981_v9  ;;  %v1197_v35 = vsel %vm1191_vm15, %v1188_v16, %v1982_v50 }
 0x2a6   : > { %v1985_v44 = vpop.permute.xlu0 %1984 }
 0x2a7   : > { %v1945_v30 = vpop.permute.xlu1 %1944  ;;  %v1987_v32 = vunpack.i.h.bf16 %v1985_v44  ;;  %v1986_v33 = vunpack.i.l.bf16 %v1985_v44  ;;  %v2502_v44 = vand.u32 127, %v1222_v29 }
 0x2a8   : > { %v1947_v36 = vunpack.i.h.bf16 %v1945_v30  ;;  %v1946_v38 = vunpack.i.l.bf16 %v1945_v30 }
 0x2a9   : > { %v1205_v46 = vsel %vm1200_vm0, %v1196_v34, %v1986_v33  ;;  %v1206_v21 = vsel %vm1200_vm0, %v1197_v35, %v1987_v32 }
 0x2aa   : > { %v1211_v39 = vpack.c.bf16 %v1206_v21, %v1205_v46  ;;  %v1148_v49 = vsel %vm605_vm2, %v2397_v14, %v1947_v36  ;;  %v1147_v51 = vsel %vm605_vm2, %v2389_v10, %v1946_v38  ;;  %vm1224_vm2 = vcmp.ge.s32.totalorder %v2502_v44, 8 }
 0x2ab   : > { %v1950_v40 = vpop.permute.xlu1 %1949  ;;  %v1227_v30 = vsel %vm1224_vm2, %v776_v22, 0.0  ;;  %v1225_v32 = vsel %vm1224_vm2, %v774_v24, 0.0  ;;  %v1228_v36 = vsel %vm1224_vm2, %v777_v0, 0.0  ;;  %v1226_v22 = vsel %vm1224_vm2, %v775_v27, 0.0 }
 0x2ac   : > { %v1952_v42 = vunpack.i.h.bf16 %v1950_v40  ;;  %v1951_v43 = vunpack.i.l.bf16 %v1950_v40  ;;  %1644 = vmatprep.mubr.msk.bf16.mxu1 %vm1260_vm1, %v1211_v39 }
 0x2ae   : > { %v1155_v61 = vsel %vm623_vm5, %v1147_v51, %v1951_v43  ;;  %v1156_v37 = vsel %vm623_vm5, %v1148_v49, %v1952_v42  ;;  %vm1365_vm5 = vcmask 1043459  }
 0x2af   : > { %v1163_v41 = vsel %vm641_vm7, %v1155_v61, %v1926_v48  ;;  %v1164_v7 = vsel %vm641_vm7, %v1156_v37, %v1927_v45  ;;  %v1955_v14 = vpop.permute.xlu1 %1954  ;;  %vm1371_vm7 = vcmask 1045509  }
 0x2b0   : > { %v1171_v10 = vsel %vm659_vm9, %v1163_v41, %v1931_v58  ;;  %v1172_v12 = vsel %vm659_vm9, %v1164_v7, %v1932_v52  ;;  %v1957_v13 = vunpack.i.h.bf16 %v1955_v14  ;;  %v1956_v31 = vunpack.i.l.bf16 %v1955_v14 }
 0x2b1   : > { %v1180_v47 = vsel %vm1173_vm13, %v1171_v10, %v1936_v4  ;;  %v1181_v15 = vsel %vm1173_vm13, %v1172_v12, %v1937_v3  ;;  %vm1436_vm13 = vcmask 1048320  }
 0x2b2   : > { %v1189_v5 = vsel %vm1182_vm14, %v1180_v47, %v1941_v53  ;;  %v1190_v6 = vsel %vm1182_vm14, %v1181_v15, %v1942_v8 }
 0x2b3   : > { %v1990_v56 = vpop.permute.xlu1 %1989  ;;  %v1198_v9 = vsel %vm1191_vm15, %v1189_v5, %v1956_v31  ;;  %v1199_v17 = vsel %vm1191_vm15, %v1190_v6, %v1957_v13 }
 0x2b4   : > { %v1992_v18 = vunpack.i.h.bf16 %v1990_v56  ;;  %v1991_v50 = vunpack.i.l.bf16 %v1990_v56 }
 0x2b6   : > { %v1207_v11 = vsel %vm1200_vm0, %v1198_v9, %v1991_v50  ;;  %v1208_v19 = vsel %vm1200_vm0, %v1199_v17, %v1992_v18 }
 0x2b7   : > { %v1212_v28 = vpack.c.bf16 %v1208_v19, %v1207_v11 }
 0x2b9   : > { %1645 = vmatmul.mubr.msk.bf16.gmra.mxu1 %vm1260_vm1, %v1212_v28 }
 0x356   : > { %v1642_v57 = vpop.f32.mrf.mxu1 }
 0x357   : > { %v1320_v16 = vadd.f32 %v1642_v57, %v1227_v30 }
 0x358   : > { %v1311_v33 = vpop.f32.mrf.mxu1 }
 0x359   : > { %v2513_v34 = vmax.f32 %v1320_v16, 0.0  ;;  %v1312_v35 = vadd.f32 %v1311_v33, %v1225_v32 }
 0x35a   : > { %v1643_v20 = vpop.f32.mrf.mxu1 }
 0x35b   : > { %v1342_v23 = vmax.f32 %v1312_v35, 0.0  ;;  %v1323_v24 = vadd.f32 %v1643_v20, %v1228_v36  ;;  %v1457_v38 = vrot.slane %v2513_v34, 3  ;;  %v1383_v46 = vrot.slane %v2513_v34, 7 }
 0x35c   : > { %v1314_v21 = vpop.f32.mrf.mxu1  ;;  %v1475_v25 = vrot.slane %v2513_v34, 4  ;;  %v1493_v0 = vrot.slane %v2513_v34, 5  ;;  %v1422_v39 = vrot.slane %v2513_v34, 1  ;;  %v1441_v26 = vrot.slane %v2513_v34, 2 }
 0x35d   : > { %v1345_v40 = vmax.f32 %v1323_v24, 0.0  ;;  %v1315_v27 = vadd.f32 %v1314_v21, %v1226_v22  ;;  %v1454_v42 = vrot.slane %v1342_v23, 5  ;;  %v1381_v43 = vrot.slane %v1342_v23, 1 }
 0x35e   : > { %v1472_v45 = vrot.slane %v1342_v23, 6  ;;  %v1400_v48 = vrot.slane %v1342_v23, 2  ;;  %v1490_v49 = vrot.slane %v1342_v23, 7  ;;  %v1419_v51 = vrot.slane %v1342_v23, 3 }
 0x35f   : > { %v1343_v52 = vmax.f32 %v1315_v27, 0.0  ;;  %v1459_v58 = vrot.slane %v1345_v40, 2  ;;  %v1385_v61 = vrot.slane %v1345_v40, 6  ;;  %v1477_v37 = vrot.slane %v1345_v40, 3 }
 0x360   : > { %v1404_v3 = vrot.slane %v1345_v40, 7  ;;  %v1495_v4 = vrot.slane %v1345_v40, 4  ;;  %v1438_v41 = vrot.slane %v1342_v23, 4  ;;  %v1443_v7 = vrot.slane %v1345_v40, 1 }
 0x361   : > { %v1455_v14 = vrot.slane %v1343_v52, 4  ;;  %v1382_v8 = vsel %vm1359_vm3, %v1343_v52, %v1381_v43  ;;  %v1473_v53 = vrot.slane %v1343_v52, 5  ;;  %v1401_v10 = vrot.slane %v1343_v52, 1 }
 0x362   : > { %v1384_v12 = vsel %vm1362_vm4, %v1383_v46, %v1382_v8  ;;  %v1491_v13 = vrot.slane %v1343_v52, 6  ;;  %v1420_v31 = vrot.slane %v1343_v52, 2  ;;  %v1439_v47 = vrot.slane %v1343_v52, 3 }
 0x363   : > { %v1456_v15 = vsel %vm1359_vm3, %v1455_v14, %v1454_v42  ;;  %v1386_v5 = vsel %vm1365_vm5, %v1385_v61, %v1384_v12  ;;  %v1474_v6 = vsel %vm1359_vm3, %v1473_v53, %v1472_v45  ;;  %v1402_v56 = vsel %vm1359_vm3, %v1401_v10, %v1400_v48 }
 0x364   : > { %v1458_v18 = vsel %vm1362_vm4, %v1457_v38, %v1456_v15  ;;  %v1476_v50 = vsel %vm1362_vm4, %v1475_v25, %v1474_v6  ;;  %v1403_v9 = vsel %vm1362_vm4, %v2513_v34, %v1402_v56  ;;  %v1492_v17 = vsel %vm1359_vm3, %v1491_v13, %v1490_v49 }
 0x365   : > { %v1460_v11 = vsel %vm1365_vm5, %v1459_v58, %v1458_v18  ;;  %v1478_v19 = vsel %vm1365_vm5, %v1477_v37, %v1476_v50  ;;  %v1405_v28 = vsel %vm1365_vm5, %v1404_v3, %v1403_v9  ;;  %v1494_v29 = vsel %vm1362_vm4, %v1493_v0, %v1492_v17 }
 0x366   : > { %v1496_v30 = vsel %vm1365_vm5, %v1495_v4, %v1494_v29  ;;  %v1421_v57 = vsel %vm1359_vm3, %v1420_v31, %v1419_v51  ;;  %v1440_v16 = vsel %vm1359_vm3, %v1439_v47, %v1438_v41  ;;  %v1358_v32 = vrot.slane %v1343_v52, 7 }
 0x367   : > { %v1423_v33 = vsel %vm1362_vm4, %v1422_v39, %v1421_v57  ;;  %v1442_v35 = vsel %vm1362_vm4, %v1441_v26, %v1440_v16  ;;  %v1361_v36 = vrot.slane %v2513_v34, 6  ;;  %v1364_v38 = vrot.slane %v1345_v40, 5 }
 0x368   : > { %v2551_v20 = vsel %vm1365_vm5, %v1345_v40, %v1423_v33  ;;  %v2554_v22 = vsel %vm1365_vm5, %v1443_v7, %v1442_v35  ;;  %v1360_v24 = vsel %vm1359_vm3, %v1358_v32, %v1342_v23  ;;  %v1231_v25 = vsel %vm1224_vm2, %v780_v55, 0.0 }
 0x369   : > { %v1363_v46 = vsel %vm1362_vm4, %v1361_v36, %v1360_v24  ;;  %v1229_v39 = vsel %vm1224_vm2, %v778_v60, 0.0  ;;  %v1232_v27 = vsel %vm1224_vm2, %v781_v63, 0.0  ;;  %v1230_v55 = vsel %vm1224_vm2, %v779_v2, 0.0 }
 0x36a   : > { %v2559_v21 = vsel %vm1365_vm5, %v1364_v38, %v1363_v46 }
 0x379   : > { %v1646_v34 = vpop.f32.mrf.mxu1 }
 0x37a   : > { %v1336_v0 = vadd.f32 %v1646_v34, %v1231_v25 }
 0x37b   : > { %v1327_v26 = vpop.f32.mrf.mxu1 }
 0x37c   : > { %v2569_v23 = vmax.f32 %v1336_v0, 0.0  ;;  %v1328_v40 = vadd.f32 %v1327_v26, %v1229_v39 }
 0x37d   : > { %v1647_v54 = vpop.f32.mrf.mxu1 }
 0x37e   : > { %v2579_v59 = vmax.f32 %v1328_v40, 0.0  ;;  %v1339_v60 = vadd.f32 %v1647_v54, %v1232_v27  ;;  %v1464_v43 = vrot.slane %v2569_v23, 7  ;;  %v1391_v62 = vrot.slane %v2569_v23, 3 }
 0x37f   : > { %v1330_v42 = vpop.f32.mrf.mxu1  ;;  %v1410_v63 = vrot.slane %v2569_v23, 4  ;;  %v1501_v45 = vrot.slane %v2569_v23, 1  ;;  %v1429_v35 = vrot.slane %v2569_v23, 5  ;;  %v1448_v34 = vrot.slane %v2569_v23, 6 }
 0x380   : > { %v2585_v1 = vmax.f32 %v1339_v60, 0.0  ;;  %v1331_v44 = vadd.f32 %v1330_v42, %v1230_v55  ;;  %v1461_v2 = vrot.slane %v2579_v59, 1  ;;  %v1387_v48 = vrot.slane %v2579_v59, 5 }
 0x381   : > { %v1479_v49 = vrot.slane %v2579_v59, 2  ;;  %v1406_v51 = vrot.slane %v2579_v59, 6  ;;  %v1497_v52 = vrot.slane %v2579_v59, 3  ;;  %v1425_v58 = vrot.slane %v2579_v59, 7 }
 0x382   : > { %v1347_v61 = vmax.f32 %v1331_v44, 0.0  ;;  %v1462_v37 = vsel %vm1368_vm6, %v1461_v2, %v1460_v11  ;;  %v1466_v3 = vrot.slane %v2585_v1, 6  ;;  %v1388_v4 = vsel %vm1368_vm6, %v1387_v48, %v1386_v5 }
 0x383   : > { %v1393_v41 = vrot.slane %v2585_v1, 2  ;;  %v1480_v7 = vsel %vm1368_vm6, %v1479_v49, %v1478_v19  ;;  %v1484_v14 = vrot.slane %v2585_v1, 7  ;;  %v1407_v8 = vsel %vm1368_vm6, %v1406_v51, %v1405_v28 }
 0x384   : > { %v1463_v53 = vsel %vm1371_vm7, %v1347_v61, %v1462_v37  ;;  %v1389_v10 = vrot.slane %v1347_v61, 4  ;;  %v1481_v12 = vrot.slane %v1347_v61, 1  ;;  %v1408_v13 = vrot.slane %v1347_v61, 5 }
 0x385   : > { %v1465_v31 = vsel %vm1374_vm8, %v1464_v43, %v1463_v53  ;;  %v1412_v47 = vrot.slane %v2585_v1, 3  ;;  %v1498_v15 = vsel %vm1368_vm6, %v1497_v52, %v1496_v30  ;;  %v1499_v5 = vrot.slane %v1347_v61, 2 }
 0x386   : > { %v1467_v6 = vsel %vm1377_vm10, %v1466_v3, %v1465_v31  ;;  %v1390_v56 = vsel %vm1371_vm7, %v1389_v10, %v1388_v4  ;;  %v1482_v18 = vsel %vm1371_vm7, %v1481_v12, %v1480_v7  ;;  %v1409_v50 = vsel %vm1371_vm7, %v1408_v13, %v1407_v8 }
 0x387   : > { %1468 = vrot.lane.b32.xlu1 %v1467_v6, %s2018_s6  ;;  %v1392_v9 = vsel %vm1374_vm8, %v1391_v62, %v1390_v56  ;;  %v1483_v17 = vsel %vm1374_vm8, %v2569_v23, %v1482_v18  ;;  %v1411_v11 = vsel %vm1374_vm8, %v1410_v63, %v1409_v50  ;;  %v1500_v19 = vsel %vm1371_vm7, %v1499_v5, %v1498_v15 }
 0x388   : > { %v1394_v28 = vsel %vm1377_vm10, %v1393_v41, %v1392_v9  ;;  %v1485_v29 = vsel %vm1377_vm10, %v1484_v14, %v1483_v17  ;;  %v1413_v30 = vsel %vm1377_vm10, %v1412_v47, %v1411_v11  ;;  %v1502_v57 = vsel %vm1374_vm8, %v1501_v45, %v1500_v19 }
 0x389   : > { %1395 = vrot.lane.b32.xlu0 %v1394_v28, %s2018_s6  ;;  %v1503_v16 = vsel %vm1377_vm10, %v2585_v1, %v1502_v57  ;;  %v1426_v32 = vsel %vm1368_vm6, %v1425_v58, %v2551_v20  ;;  %v1427_v33 = vrot.slane %v1347_v61, 6  ;;  %v1446_v36 = vrot.slane %v1347_v61, 7 }
 0x38a   : > { %v1445_v24 = vsel %vm1368_vm6, %v2579_v59, %v2554_v22  ;;  %v1370_v38 = vrot.slane %v1347_v61, 3  ;;  %v1431_v25 = vrot.slane %v2585_v1, 4  ;;  %v1367_v20 = vrot.slane %v2579_v59, 4 }
 0x38b   : > { %1486 = vrot.lane.b32.xlu1 %v1485_v29, %s2022_s23  ;;  %v1428_v46 = vsel %vm1371_vm7, %v1427_v33, %v1426_v32  ;;  %v1450_v22 = vrot.slane %v2585_v1, 5  ;;  %v1447_v39 = vsel %vm1371_vm7, %v1446_v36, %v1445_v24  ;;  %v1373_v27 = vrot.slane %v2569_v23, 2 }
 0x38c   : > { %v1430_v0 = vsel %vm1374_vm8, %v1429_v35, %v1428_v46  ;;  %v1449_v40 = vsel %vm1374_vm8, %v1448_v34, %v1447_v39  ;;  %v1369_v54 = vsel %vm1368_vm6, %v1367_v20, %v2559_v21  ;;  %v1376_v59 = vrot.slane %v2585_v1, 1 }
 0x38d   : > { %1414 = vrot.lane.b32.xlu0 %v1413_v30, %s2022_s23  ;;  %v1432_v26 = vsel %vm1377_vm10, %v1431_v25, %v1430_v0  ;;  %v1451_v55 = vsel %vm1377_vm10, %v1450_v22, %v1449_v40  ;;  %v1372_v60 = vsel %vm1371_vm7, %v1370_v38, %v1369_v54 }
 0x38e   : > { %1453 = vst.msk [vmem:[%s2637_s25 + $0x8] sm:$0xff] %vm659_vm9, %v1451_v55  ;;  %v1375_v42 = vsel %vm1374_vm8, %v1373_v27, %v1372_v60 }
 0x38f   : > { %1504 = vrot.lane.b32.xlu1 %v1503_v16, %s2023_s26  ;;  %v1378_v23 = vsel %vm1377_vm10, %v1376_v59, %v1375_v42 }
 0x390   : > { %1380 = vst.msk [vmem:[%s2637_s25] sm:$0xff] %vm659_vm9, %v1378_v23 }
 0x391   : > { %1433 = vrot.lane.b32.xlu0 %v1432_v26, %s2023_s26 }
 0x3f9   : > { %v1469_v21 = vpop.permute.xlu1 %1468 }
 0x3fa   : > { %1471 = vst.msk [vmem:[%s2637_s25 + $0x8] sm:$0xff] %vm1398_vm11, %v1469_v21 }
 0x3fb   : > { %v1396_v43 = vpop.permute.xlu0 %1395 }
 0x3fc   : > { %1399 = vst.msk [vmem:[%s2637_s25] sm:$0xff] %vm1398_vm11, %v1396_v43 }
 0x3fd   : > { %v1487_v62 = vpop.permute.xlu1 %1486 }
 0x3fe   : > { %1489 = vst.msk [vmem:[%s2637_s25 + $0x8] sm:$0xff] %vm1417_vm12, %v1487_v62 }
 0x3ff   : > { %v1415_v63 = vpop.permute.xlu0 %1414 }
 0x400   : > { %1418 = vst.msk [vmem:[%s2637_s25] sm:$0xff] %vm1417_vm12, %v1415_v63 }
 0x401   : > { %v1505_v45 = vpop.permute.xlu1 %1504 }
 0x402   : > { %1507 = vst.msk [vmem:[%s2637_s25 + $0x8] sm:$0xff] %vm1436_vm13, %v1505_v45 }
 0x403   : > { %v1434_v1 = vpop.permute.xlu0 %1433 }
 0x404   : > { %1437 = vst.msk [vmem:[%s2637_s25] sm:$0xff] %vm1436_vm13, %v1434_v1 }
 0x405 PF: > { %s13_s12 = sadd.s32 1, %s2007_s12  }
 0x406   : > { %p10_p4 = scmp.ge.s32.totalorder %s13_s12, 4  }
 0x408   :  { %12 = sbr.rel (!%p10_p4) target bundleno = 1 (0x1), region = 67 }

</bundles_post_ra>
